<compile_context>
chip_gen: v7x
topology: tpu7x:2x2x1
jax: 0.10.0
libtpu: 0.0.40
codegen_flags: <defaults>
</compile_context>

<pallas_src>
import jax
import jax.numpy as jnp
import numpy as np
from jax import lax
from jax.experimental import pallas as pl
from jax.experimental.pallas import tpu as pltpu

LRELU_SLOPE = 0.1

# Small, forward-consistent hyperparameters (scaled-down 80/128/7/128 defaults)
B = 2        # batch
C_IN = 16    # input_channels
C_INT = 32   # internal_channels
N_RES = 3    # num_resblock
C_SPK = 32   # speaker_encoding_channels
T = 16       # sequence length
KSIZE = 5
PAD = 2
BT = B * T


def speaker_encoder_kernel(x_ref, w_in_ref, b_in_ref, w1_ref, b1_ref,
                           w2_ref, b2_ref, w_out_ref, b_out_ref, o_ref):
    # ---- constants, built once per invocation --------------------------------
    # Within-batch time index of every row of the flat [B*T, C] slab.
    tpos = lax.broadcasted_iota(jnp.int32, (BT, 1), 0) % T
    # Per-tap validity mask ([BT, 1] f32): tap k reads position tpos + (k - PAD),
    # which must stay inside [0, T) of the SAME batch element.  These masks also
    # zero the rows that pltpu.roll wraps around the end of the slab.
    tap_masks = {}
    for k in range(KSIZE):
        if k == PAD:                                   # center tap is always valid
            continue
        off = k - PAD
        tap_masks[k] = jnp.where((tpos + off >= 0) & (tpos + off < T),
                                 1.0, 0.0).astype(jnp.float32)

    def conv5(g, w_ref, b_ref, n):
        """conv1d(k=5, pad=2) over the flat [BT, C_INT] slab as 5 accumulated
        bf16 MXU dots; per-tap alignment via XLU roll + boundary mask."""
        acc = jnp.dot(g.astype(jnp.bfloat16), w_ref[n, PAD],
                      preferred_element_type=jnp.float32)        # center tap
        for k in range(KSIZE):
            if k == PAD:
                continue
            s = pltpu.roll(g, (PAD - k) % BT, 0) * tap_masks[k]  # XLU rotate + mask
            acc = acc + jnp.dot(s.astype(jnp.bfloat16), w_ref[n, k],
                                preferred_element_type=jnp.float32)
        return acc + b_ref[n]

    # ---- input 1x1 conv (matmul + bias) ---------------------------------------
    h = jnp.dot(x_ref[...], w_in_ref[...],
                preferred_element_type=jnp.float32) + b_in_ref[...]  # [BT, C_INT] f32

    # ---- N_RES ResBlocks: conv5 -> LeakyReLU -> conv5 -> +residual ------------
    # Statically unrolled: N_RES is a small fixed trip count; weight loads are
    # static slices of the VMEM-resident weight tensors.
    for n in range(N_RES):
        y = conv5(h, w1_ref, b1_ref, n)
        y = jnp.maximum(y, LRELU_SLOPE * y)                # LeakyReLU(0.1), f32
        y = conv5(y, w2_ref, b2_ref, n)
        h = h + y

    # ---- mean over time (XLU reduce), then output 1x1 conv --------------------
    m = jnp.sum(h.reshape(B, T, C_INT), axis=1) * (1.0 / T)             # [B, C_INT]
    out = jnp.dot(m, w_out_ref[...],
                  preferred_element_type=jnp.float32) + b_out_ref[...]  # [B, C_SPK]
    o_ref[...] = out.astype(o_ref.dtype)


def speaker_encoder(x, packed):
    """x: [B, C_IN, T] (PyTorch NCT). Returns [B, C_SPK, 1]."""
    # channels-last, batch folded onto the row (sublane) axis, bf16 MXU operand
    x_flat = jnp.transpose(x, (0, 2, 1)).reshape(BT, C_IN).astype(jnp.bfloat16)
    vmem = pl.BlockSpec(memory_space=pltpu.MemorySpace.VMEM)
    out = pl.pallas_call(
        speaker_encoder_kernel,
        out_shape=jax.ShapeDtypeStruct((B, C_SPK), jnp.float32),
        in_specs=[vmem] * 9,
        out_specs=vmem,
        compiler_params=pltpu.CompilerParams(vmem_limit_bytes=32 * 1024 * 1024),
    )(x_flat, packed["w_in"], packed["b_in"], packed["w1"], packed["b1"],
      packed["w2"], packed["b2"], packed["w_out"], packed["b_out"])
    return out[:, :, None]                                 # [B, C_SPK, 1]


def init_params(key):
    """Canonical f32 parameters, channels-last: w[..., k, ci, co] here is
    torch_W[co, ci, k] transposed, i.e. x_cl @ w[k] == conv tap k."""
    ks = jax.random.split(key, 8)
    s = 0.1
    return dict(
        w_in=s * jax.random.normal(ks[0], (C_IN, C_INT), jnp.float32),
        b_in=s * jax.random.normal(ks[1], (1, C_INT), jnp.float32),
        w1=s * jax.random.normal(ks[2], (N_RES, KSIZE, C_INT, C_INT), jnp.float32),
        b1=s * jax.random.normal(ks[3], (N_RES, 1, C_INT), jnp.float32),
        w2=s * jax.random.normal(ks[4], (N_RES, KSIZE, C_INT, C_INT), jnp.float32),
        b2=s * jax.random.normal(ks[5], (N_RES, 1, C_INT), jnp.float32),
        w_out=s * jax.random.normal(ks[6], (C_INT, C_SPK), jnp.float32),
        b_out=s * jax.random.normal(ks[7], (1, C_SPK), jnp.float32),
    )


def pack_params(p):
    """Kernel layout: per-tap conv weights kept as [N_RES, KSIZE, C_INT, C_INT];
    MXU operands cast to bf16, biases / output projection stay f32."""
    return dict(
        w_in=p["w_in"].astype(jnp.bfloat16),
        b_in=p["b_in"],
        w1=p["w1"].astype(jnp.bfloat16),
        b1=p["b1"],
        w2=p["w2"].astype(jnp.bfloat16),
        b2=p["b2"],
        w_out=p["w_out"],
        b_out=p["b_out"],
    )


def reference_forward(x, p):
    """Pure-f32 JAX reference mirroring the PyTorch forward (channels-last math)."""
    h = jnp.transpose(x, (0, 2, 1)) @ p["w_in"] + p["b_in"]     # [B, T, C_INT]

    def conv5(inp, w, b):
        hp = jnp.pad(inp, ((0, 0), (PAD, PAD), (0, 0)))
        acc = 0.0
        for k in range(KSIZE):
            acc = acc + hp[:, k:k + T, :] @ w[k]
        return acc + b

    for n in range(N_RES):
        y = conv5(h, p["w1"][n], p["b1"][n])
        y = jnp.where(y >= 0, y, LRELU_SLOPE * y)
        y = conv5(y, p["w2"][n], p["b2"][n])
        h = h + y
    m = h.mean(axis=1, keepdims=True)
    out = m @ p["w_out"] + p["b_out"]
    return jnp.transpose(out, (0, 2, 1))                        # [B, C_SPK, 1]


if __name__ == "__main__":
    key = jax.random.PRNGKey(0)
    pkey, xkey = jax.random.split(key)
    params = init_params(pkey)
    x = jax.random.normal(xkey, (B, C_IN, T), jnp.float32)      # NCT, like PyTorch

    out = jax.block_until_ready(speaker_encoder(x, pack_params(params)))
    ref = jax.block_until_ready(reference_forward(x, params))

    assert out.shape == (B, C_SPK, 1), out.shape
    # Kernel uses bf16 MXU operands with f32 accumulation; compare to the pure-f32
    # reference with a tolerance sized for bf16 quantization (measured err ~1e-3..1e-2).
    err = float(np.max(np.abs(np.asarray(out) - np.asarray(ref))))
    assert np.allclose(np.asarray(out), np.asarray(ref), atol=3e-2, rtol=3e-2), err
    print("KERNEL_OK")
</pallas_src>

<mosaic_0001>
module attributes {stable_mosaic.version = 11 : i64} {
  func.func @speaker_encoder_kernel(%arg0: memref<32x16xbf16, #tpu.memory_space<vmem>>, %arg1: memref<16x32xbf16, #tpu.memory_space<vmem>>, %arg2: memref<1x32xf32, #tpu.memory_space<vmem>>, %arg3: memref<3x5x32x32xbf16, #tpu.memory_space<vmem>>, %arg4: memref<3x1x32xf32, #tpu.memory_space<vmem>>, %arg5: memref<3x5x32x32xbf16, #tpu.memory_space<vmem>>, %arg6: memref<3x1x32xf32, #tpu.memory_space<vmem>>, %arg7: memref<32x32xf32, #tpu.memory_space<vmem>>, %arg8: memref<1x32xf32, #tpu.memory_space<vmem>>, %arg9: memref<2x32xf32, #tpu.memory_space<vmem>>) attributes {dimension_semantics = [], scalar_prefetch = 0 : i64, scratch_operands = 0 : i64, tpu.core_type = #tpu.core_type<tc>} {
    %0 = tpu.iota {dimensions = array<i32: 0>} : vector<32x1xi32>
    %c16_i32 = arith.constant 16 : i32
    %c0_i32 = arith.constant 0 : i32
    %1 = arith.cmpi eq, %c16_i32, %c0_i32 : i32
    %c1_i32 = arith.constant 1 : i32
    %2 = arith.select %1, %c1_i32, %c16_i32 : i32
    %3 = vector.broadcast %2 : i32 to vector<32x1xi32>
    %4 = arith.remsi %0, %3 : vector<32x1xi32>
    %c0_i32_0 = arith.constant 0 : i32
    %5 = vector.broadcast %c0_i32_0 : i32 to vector<32x1xi32>
    %6 = arith.cmpi ne, %4, %5 : vector<32x1xi32>
    %c0_i32_1 = arith.constant 0 : i32
    %7 = vector.broadcast %c0_i32_1 : i32 to vector<32x1xi32>
    %8 = arith.cmpi slt, %4, %7 : vector<32x1xi32>
    %c0_i32_2 = arith.constant 0 : i32
    %9 = arith.cmpi slt, %2, %c0_i32_2 : i32
    %10 = vector.broadcast %9 : i1 to vector<32x1xi1>
    %11 = vector.broadcast %10 : vector<32x1xi1> to vector<32x1xi1>
    %12 = arith.xori %8, %11 : vector<32x1xi1>
    %13 = arith.andi %12, %6 : vector<32x1xi1>
    %14 = vector.broadcast %2 : i32 to vector<32x1xi32>
    %15 = arith.addi %4, %14 : vector<32x1xi32>
    %16 = arith.select %13, %15, %4 : vector<32x1xi1>, vector<32x1xi32>
    %c-2_i32 = arith.constant -2 : i32
    %17 = vector.broadcast %c-2_i32 : i32 to vector<32x1xi32>
    %18 = arith.addi %16, %17 : vector<32x1xi32>
    %c0_i32_3 = arith.constant 0 : i32
    %19 = vector.broadcast %c0_i32_3 : i32 to vector<32x1xi32>
    %20 = arith.cmpi sge, %18, %19 : vector<32x1xi32>
    %c-2_i32_4 = arith.constant -2 : i32
    %21 = vector.broadcast %c-2_i32_4 : i32 to vector<32x1xi32>
    %22 = arith.addi %16, %21 : vector<32x1xi32>
    %c16_i32_5 = arith.constant 16 : i32
    %23 = vector.broadcast %c16_i32_5 : i32 to vector<32x1xi32>
    %24 = arith.cmpi slt, %22, %23 : vector<32x1xi32>
    %25 = arith.andi %20, %24 : vector<32x1xi1>
    %cst = arith.constant 1.000000e+00 : f32
    %cst_6 = arith.constant 0.000000e+00 : f32
    %26 = vector.broadcast %cst : f32 to vector<32x1xf32>
    %27 = vector.broadcast %cst_6 : f32 to vector<32x1xf32>
    %28 = arith.select %25, %26, %27 : vector<32x1xi1>, vector<32x1xf32>
    %c-1_i32 = arith.constant -1 : i32
    %29 = vector.broadcast %c-1_i32 : i32 to vector<32x1xi32>
    %30 = arith.addi %16, %29 : vector<32x1xi32>
    %c0_i32_7 = arith.constant 0 : i32
    %31 = vector.broadcast %c0_i32_7 : i32 to vector<32x1xi32>
    %32 = arith.cmpi sge, %30, %31 : vector<32x1xi32>
    %c-1_i32_8 = arith.constant -1 : i32
    %33 = vector.broadcast %c-1_i32_8 : i32 to vector<32x1xi32>
    %34 = arith.addi %16, %33 : vector<32x1xi32>
    %c16_i32_9 = arith.constant 16 : i32
    %35 = vector.broadcast %c16_i32_9 : i32 to vector<32x1xi32>
    %36 = arith.cmpi slt, %34, %35 : vector<32x1xi32>
    %37 = arith.andi %32, %36 : vector<32x1xi1>
    %cst_10 = arith.constant 1.000000e+00 : f32
    %cst_11 = arith.constant 0.000000e+00 : f32
    %38 = vector.broadcast %cst_10 : f32 to vector<32x1xf32>
    %39 = vector.broadcast %cst_11 : f32 to vector<32x1xf32>
    %40 = arith.select %37, %38, %39 : vector<32x1xi1>, vector<32x1xf32>
    %c1_i32_12 = arith.constant 1 : i32
    %41 = vector.broadcast %c1_i32_12 : i32 to vector<32x1xi32>
    %42 = arith.addi %16, %41 : vector<32x1xi32>
    %c0_i32_13 = arith.constant 0 : i32
    %43 = vector.broadcast %c0_i32_13 : i32 to vector<32x1xi32>
    %44 = arith.cmpi sge, %42, %43 : vector<32x1xi32>
    %c1_i32_14 = arith.constant 1 : i32
    %45 = vector.broadcast %c1_i32_14 : i32 to vector<32x1xi32>
    %46 = arith.addi %16, %45 : vector<32x1xi32>
    %c16_i32_15 = arith.constant 16 : i32
    %47 = vector.broadcast %c16_i32_15 : i32 to vector<32x1xi32>
    %48 = arith.cmpi slt, %46, %47 : vector<32x1xi32>
    %49 = arith.andi %44, %48 : vector<32x1xi1>
    %cst_16 = arith.constant 1.000000e+00 : f32
    %cst_17 = arith.constant 0.000000e+00 : f32
    %50 = vector.broadcast %cst_16 : f32 to vector<32x1xf32>
    %51 = vector.broadcast %cst_17 : f32 to vector<32x1xf32>
    %52 = arith.select %49, %50, %51 : vector<32x1xi1>, vector<32x1xf32>
    %c2_i32 = arith.constant 2 : i32
    %53 = vector.broadcast %c2_i32 : i32 to vector<32x1xi32>
    %54 = arith.addi %16, %53 : vector<32x1xi32>
    %c0_i32_18 = arith.constant 0 : i32
    %55 = vector.broadcast %c0_i32_18 : i32 to vector<32x1xi32>
    %56 = arith.cmpi sge, %54, %55 : vector<32x1xi32>
    %c2_i32_19 = arith.constant 2 : i32
    %57 = vector.broadcast %c2_i32_19 : i32 to vector<32x1xi32>
    %58 = arith.addi %16, %57 : vector<32x1xi32>
    %c16_i32_20 = arith.constant 16 : i32
    %59 = vector.broadcast %c16_i32_20 : i32 to vector<32x1xi32>
    %60 = arith.cmpi slt, %58, %59 : vector<32x1xi32>
    %61 = arith.andi %56, %60 : vector<32x1xi1>
    %cst_21 = arith.constant 1.000000e+00 : f32
    %cst_22 = arith.constant 0.000000e+00 : f32
    %62 = vector.broadcast %cst_21 : f32 to vector<32x1xf32>
    %63 = vector.broadcast %cst_22 : f32 to vector<32x1xf32>
    %64 = arith.select %61, %62, %63 : vector<32x1xi1>, vector<32x1xf32>
    %c0 = arith.constant 0 : index
    %c0_23 = arith.constant 0 : index
    %65 = vector.load %arg0[%c0, %c0_23] : memref<32x16xbf16, #tpu.memory_space<vmem>>, vector<32x16xbf16>
    %c0_24 = arith.constant 0 : index
    %c0_25 = arith.constant 0 : index
    %66 = vector.load %arg1[%c0_24, %c0_25] : memref<16x32xbf16, #tpu.memory_space<vmem>>, vector<16x32xbf16>
    %cst_26 = arith.constant dense<0.000000e+00> : vector<32x32xf32>
    %67 = tpu.matmul %65, %66, %cst_26 {dimension_numbers = #tpu.dot_dimension_numbers<[1], [0], [0], [1], [0, 0, 1, 1], [], []>} : vector<32x16xbf16>, vector<16x32xbf16>, vector<32x32xf32> -> vector<32x32xf32>
    %c0_27 = arith.constant 0 : index
    %c0_28 = arith.constant 0 : index
    %68 = vector.load %arg2[%c0_27, %c0_28] : memref<1x32xf32, #tpu.memory_space<vmem>>, vector<1x32xf32>
    %69 = vector.broadcast %68 : vector<1x32xf32> to vector<32x32xf32>
    %70 = arith.addf %67, %69 : vector<32x32xf32>
    %71 = arith.truncf %70 : vector<32x32xf32> to vector<32x32xbf16>
    %c0_29 = arith.constant 0 : index
    %c2 = arith.constant 2 : index
    %c0_30 = arith.constant 0 : index
    %c0_31 = arith.constant 0 : index
    %72 = vector.load %arg3[%c0_29, %c2, %c0_30, %c0_31] : memref<3x5x32x32xbf16, #tpu.memory_space<vmem>>, vector<1x1x32x32xbf16>
    %73 = vector.shape_cast %72 : vector<1x1x32x32xbf16> to vector<32x32xbf16>
    %cst_32 = arith.constant dense<0.000000e+00> : vector<32x32xf32>
    %74 = tpu.matmul %71, %73, %cst_32 {dimension_numbers = #tpu.dot_dimension_numbers<[1], [0], [0], [1], [0, 0, 1, 1], [], []>} : vector<32x32xbf16>, vector<32x32xbf16>, vector<32x32xf32> -> vector<32x32xf32>
    %c2_i32_33 = arith.constant 2 : i32
    %75 = tpu.dynamic_rotate %70 by %c2_i32_33 dim 0 : vector<32x32xf32>, i32 -> vector<32x32xf32>
    %76 = vector.broadcast %28 : vector<32x1xf32> to vector<32x32xf32>
    %77 = arith.mulf %75, %76 : vector<32x32xf32>
    %78 = arith.truncf %77 : vector<32x32xf32> to vector<32x32xbf16>
    %c0_34 = arith.constant 0 : index
    %c0_35 = arith.constant 0 : index
    %c0_36 = arith.constant 0 : index
    %c0_37 = arith.constant 0 : index
    %79 = vector.load %arg3[%c0_34, %c0_35, %c0_36, %c0_37] : memref<3x5x32x32xbf16, #tpu.memory_space<vmem>>, vector<1x1x32x32xbf16>
    %80 = vector.shape_cast %79 : vector<1x1x32x32xbf16> to vector<32x32xbf16>
    %cst_38 = arith.constant dense<0.000000e+00> : vector<32x32xf32>
    %81 = tpu.matmul %78, %80, %cst_38 {dimension_numbers = #tpu.dot_dimension_numbers<[1], [0], [0], [1], [0, 0, 1, 1], [], []>} : vector<32x32xbf16>, vector<32x32xbf16>, vector<32x32xf32> -> vector<32x32xf32>
    %82 = arith.addf %74, %81 : vector<32x32xf32>
    %c1_i32_39 = arith.constant 1 : i32
    %83 = tpu.dynamic_rotate %70 by %c1_i32_39 dim 0 : vector<32x32xf32>, i32 -> vector<32x32xf32>
    %84 = vector.broadcast %40 : vector<32x1xf32> to vector<32x32xf32>
    %85 = arith.mulf %83, %84 : vector<32x32xf32>
    %86 = arith.truncf %85 : vector<32x32xf32> to vector<32x32xbf16>
    %c0_40 = arith.constant 0 : index
    %c1 = arith.constant 1 : index
    %c0_41 = arith.constant 0 : index
    %c0_42 = arith.constant 0 : index
    %87 = vector.load %arg3[%c0_40, %c1, %c0_41, %c0_42] : memref<3x5x32x32xbf16, #tpu.memory_space<vmem>>, vector<1x1x32x32xbf16>
    %88 = vector.shape_cast %87 : vector<1x1x32x32xbf16> to vector<32x32xbf16>
    %cst_43 = arith.constant dense<0.000000e+00> : vector<32x32xf32>
    %89 = tpu.matmul %86, %88, %cst_43 {dimension_numbers = #tpu.dot_dimension_numbers<[1], [0], [0], [1], [0, 0, 1, 1], [], []>} : vector<32x32xbf16>, vector<32x32xbf16>, vector<32x32xf32> -> vector<32x32xf32>
    %90 = arith.addf %82, %89 : vector<32x32xf32>
    %c31_i32 = arith.constant 31 : i32
    %91 = tpu.dynamic_rotate %70 by %c31_i32 dim 0 : vector<32x32xf32>, i32 -> vector<32x32xf32>
    %92 = vector.broadcast %52 : vector<32x1xf32> to vector<32x32xf32>
    %93 = arith.mulf %91, %92 : vector<32x32xf32>
    %94 = arith.truncf %93 : vector<32x32xf32> to vector<32x32xbf16>
    %c0_44 = arith.constant 0 : index
    %c3 = arith.constant 3 : index
    %c0_45 = arith.constant 0 : index
    %c0_46 = arith.constant 0 : index
    %95 = vector.load %arg3[%c0_44, %c3, %c0_45, %c0_46] : memref<3x5x32x32xbf16, #tpu.memory_space<vmem>>, vector<1x1x32x32xbf16>
    %96 = vector.shape_cast %95 : vector<1x1x32x32xbf16> to vector<32x32xbf16>
    %cst_47 = arith.constant dense<0.000000e+00> : vector<32x32xf32>
    %97 = tpu.matmul %94, %96, %cst_47 {dimension_numbers = #tpu.dot_dimension_numbers<[1], [0], [0], [1], [0, 0, 1, 1], [], []>} : vector<32x32xbf16>, vector<32x32xbf16>, vector<32x32xf32> -> vector<32x32xf32>
    %98 = arith.addf %90, %97 : vector<32x32xf32>
    %c30_i32 = arith.constant 30 : i32
    %99 = tpu.dynamic_rotate %70 by %c30_i32 dim 0 : vector<32x32xf32>, i32 -> vector<32x32xf32>
    %100 = vector.broadcast %64 : vector<32x1xf32> to vector<32x32xf32>
    %101 = arith.mulf %99, %100 : vector<32x32xf32>
    %102 = arith.truncf %101 : vector<32x32xf32> to vector<32x32xbf16>
    %c0_48 = arith.constant 0 : index
    %c4 = arith.constant 4 : index
    %c0_49 = arith.constant 0 : index
    %c0_50 = arith.constant 0 : index
    %103 = vector.load %arg3[%c0_48, %c4, %c0_49, %c0_50] : memref<3x5x32x32xbf16, #tpu.memory_space<vmem>>, vector<1x1x32x32xbf16>
    %104 = vector.shape_cast %103 : vector<1x1x32x32xbf16> to vector<32x32xbf16>
    %cst_51 = arith.constant dense<0.000000e+00> : vector<32x32xf32>
    %105 = tpu.matmul %102, %104, %cst_51 {dimension_numbers = #tpu.dot_dimension_numbers<[1], [0], [0], [1], [0, 0, 1, 1], [], []>} : vector<32x32xbf16>, vector<32x32xbf16>, vector<32x32xf32> -> vector<32x32xf32>
    %106 = arith.addf %98, %105 : vector<32x32xf32>
    %c0_52 = arith.constant 0 : index
    %c0_53 = arith.constant 0 : index
    %c0_54 = arith.constant 0 : index
    %107 = vector.load %arg4[%c0_52, %c0_53, %c0_54] : memref<3x1x32xf32, #tpu.memory_space<vmem>>, vector<1x1x32xf32>
    %108 = vector.shape_cast %107 : vector<1x1x32xf32> to vector<1x32xf32>
    %109 = vector.broadcast %108 : vector<1x32xf32> to vector<32x32xf32>
    %110 = arith.addf %106, %109 : vector<32x32xf32>
    %cst_55 = arith.constant 1.000000e-01 : f32
    %111 = vector.broadcast %cst_55 : f32 to vector<32x32xf32>
    %112 = arith.mulf %111, %110 : vector<32x32xf32>
    %113 = arith.maximumf %110, %112 : vector<32x32xf32>
    %114 = arith.truncf %113 : vector<32x32xf32> to vector<32x32xbf16>
    %c0_56 = arith.constant 0 : index
    %c2_57 = arith.constant 2 : index
    %c0_58 = arith.constant 0 : index
    %c0_59 = arith.constant 0 : index
    %115 = vector.load %arg5[%c0_56, %c2_57, %c0_58, %c0_59] : memref<3x5x32x32xbf16, #tpu.memory_space<vmem>>, vector<1x1x32x32xbf16>
    %116 = vector.shape_cast %115 : vector<1x1x32x32xbf16> to vector<32x32xbf16>
    %cst_60 = arith.constant dense<0.000000e+00> : vector<32x32xf32>
    %117 = tpu.matmul %114, %116, %cst_60 {dimension_numbers = #tpu.dot_dimension_numbers<[1], [0], [0], [1], [0, 0, 1, 1], [], []>} : vector<32x32xbf16>, vector<32x32xbf16>, vector<32x32xf32> -> vector<32x32xf32>
    %c2_i32_61 = arith.constant 2 : i32
    %118 = tpu.dynamic_rotate %113 by %c2_i32_61 dim 0 : vector<32x32xf32>, i32 -> vector<32x32xf32>
    %119 = vector.broadcast %28 : vector<32x1xf32> to vector<32x32xf32>
    %120 = arith.mulf %118, %119 : vector<32x32xf32>
    %121 = arith.truncf %120 : vector<32x32xf32> to vector<32x32xbf16>
    %c0_62 = arith.constant 0 : index
    %c0_63 = arith.constant 0 : index
    %c0_64 = arith.constant 0 : index
    %c0_65 = arith.constant 0 : index
    %122 = vector.load %arg5[%c0_62, %c0_63, %c0_64, %c0_65] : memref<3x5x32x32xbf16, #tpu.memory_space<vmem>>, vector<1x1x32x32xbf16>
    %123 = vector.shape_cast %122 : vector<1x1x32x32xbf16> to vector<32x32xbf16>
    %cst_66 = arith.constant dense<0.000000e+00> : vector<32x32xf32>
    %124 = tpu.matmul %121, %123, %cst_66 {dimension_numbers = #tpu.dot_dimension_numbers<[1], [0], [0], [1], [0, 0, 1, 1], [], []>} : vector<32x32xbf16>, vector<32x32xbf16>, vector<32x32xf32> -> vector<32x32xf32>
    %125 = arith.addf %117, %124 : vector<32x32xf32>
    %c1_i32_67 = arith.constant 1 : i32
    %126 = tpu.dynamic_rotate %113 by %c1_i32_67 dim 0 : vector<32x32xf32>, i32 -> vector<32x32xf32>
    %127 = vector.broadcast %40 : vector<32x1xf32> to vector<32x32xf32>
    %128 = arith.mulf %126, %127 : vector<32x32xf32>
    %129 = arith.truncf %128 : vector<32x32xf32> to vector<32x32xbf16>
    %c0_68 = arith.constant 0 : index
    %c1_69 = arith.constant 1 : index
    %c0_70 = arith.constant 0 : index
    %c0_71 = arith.constant 0 : index
    %130 = vector.load %arg5[%c0_68, %c1_69, %c0_70, %c0_71] : memref<3x5x32x32xbf16, #tpu.memory_space<vmem>>, vector<1x1x32x32xbf16>
    %131 = vector.shape_cast %130 : vector<1x1x32x32xbf16> to vector<32x32xbf16>
    %cst_72 = arith.constant dense<0.000000e+00> : vector<32x32xf32>
    %132 = tpu.matmul %129, %131, %cst_72 {dimension_numbers = #tpu.dot_dimension_numbers<[1], [0], [0], [1], [0, 0, 1, 1], [], []>} : vector<32x32xbf16>, vector<32x32xbf16>, vector<32x32xf32> -> vector<32x32xf32>
    %133 = arith.addf %125, %132 : vector<32x32xf32>
    %c31_i32_73 = arith.constant 31 : i32
    %134 = tpu.dynamic_rotate %113 by %c31_i32_73 dim 0 : vector<32x32xf32>, i32 -> vector<32x32xf32>
    %135 = vector.broadcast %52 : vector<32x1xf32> to vector<32x32xf32>
    %136 = arith.mulf %134, %135 : vector<32x32xf32>
    %137 = arith.truncf %136 : vector<32x32xf32> to vector<32x32xbf16>
    %c0_74 = arith.constant 0 : index
    %c3_75 = arith.constant 3 : index
    %c0_76 = arith.constant 0 : index
    %c0_77 = arith.constant 0 : index
    %138 = vector.load %arg5[%c0_74, %c3_75, %c0_76, %c0_77] : memref<3x5x32x32xbf16, #tpu.memory_space<vmem>>, vector<1x1x32x32xbf16>
    %139 = vector.shape_cast %138 : vector<1x1x32x32xbf16> to vector<32x32xbf16>
    %cst_78 = arith.constant dense<0.000000e+00> : vector<32x32xf32>
    %140 = tpu.matmul %137, %139, %cst_78 {dimension_numbers = #tpu.dot_dimension_numbers<[1], [0], [0], [1], [0, 0, 1, 1], [], []>} : vector<32x32xbf16>, vector<32x32xbf16>, vector<32x32xf32> -> vector<32x32xf32>
    %141 = arith.addf %133, %140 : vector<32x32xf32>
    %c30_i32_79 = arith.constant 30 : i32
    %142 = tpu.dynamic_rotate %113 by %c30_i32_79 dim 0 : vector<32x32xf32>, i32 -> vector<32x32xf32>
    %143 = vector.broadcast %64 : vector<32x1xf32> to vector<32x32xf32>
    %144 = arith.mulf %142, %143 : vector<32x32xf32>
    %145 = arith.truncf %144 : vector<32x32xf32> to vector<32x32xbf16>
    %c0_80 = arith.constant 0 : index
    %c4_81 = arith.constant 4 : index
    %c0_82 = arith.constant 0 : index
    %c0_83 = arith.constant 0 : index
    %146 = vector.load %arg5[%c0_80, %c4_81, %c0_82, %c0_83] : memref<3x5x32x32xbf16, #tpu.memory_space<vmem>>, vector<1x1x32x32xbf16>
    %147 = vector.shape_cast %146 : vector<1x1x32x32xbf16> to vector<32x32xbf16>
    %cst_84 = arith.constant dense<0.000000e+00> : vector<32x32xf32>
    %148 = tpu.matmul %145, %147, %cst_84 {dimension_numbers = #tpu.dot_dimension_numbers<[1], [0], [0], [1], [0, 0, 1, 1], [], []>} : vector<32x32xbf16>, vector<32x32xbf16>, vector<32x32xf32> -> vector<32x32xf32>
    %149 = arith.addf %141, %148 : vector<32x32xf32>
    %c0_85 = arith.constant 0 : index
    %c0_86 = arith.constant 0 : index
    %c0_87 = arith.constant 0 : index
    %150 = vector.load %arg6[%c0_85, %c0_86, %c0_87] : memref<3x1x32xf32, #tpu.memory_space<vmem>>, vector<1x1x32xf32>
    %151 = vector.shape_cast %150 : vector<1x1x32xf32> to vector<1x32xf32>
    %152 = vector.broadcast %151 : vector<1x32xf32> to vector<32x32xf32>
    %153 = arith.addf %149, %152 : vector<32x32xf32>
    %154 = arith.addf %70, %153 : vector<32x32xf32>
    %155 = arith.truncf %154 : vector<32x32xf32> to vector<32x32xbf16>
    %c1_88 = arith.constant 1 : index
    %c2_89 = arith.constant 2 : index
    %c0_90 = arith.constant 0 : index
    %c0_91 = arith.constant 0 : index
    %156 = vector.load %arg3[%c1_88, %c2_89, %c0_90, %c0_91] : memref<3x5x32x32xbf16, #tpu.memory_space<vmem>>, vector<1x1x32x32xbf16>
    %157 = vector.shape_cast %156 : vector<1x1x32x32xbf16> to vector<32x32xbf16>
    %cst_92 = arith.constant dense<0.000000e+00> : vector<32x32xf32>
    %158 = tpu.matmul %155, %157, %cst_92 {dimension_numbers = #tpu.dot_dimension_numbers<[1], [0], [0], [1], [0, 0, 1, 1], [], []>} : vector<32x32xbf16>, vector<32x32xbf16>, vector<32x32xf32> -> vector<32x32xf32>
    %c2_i32_93 = arith.constant 2 : i32
    %159 = tpu.dynamic_rotate %154 by %c2_i32_93 dim 0 : vector<32x32xf32>, i32 -> vector<32x32xf32>
    %160 = vector.broadcast %28 : vector<32x1xf32> to vector<32x32xf32>
    %161 = arith.mulf %159, %160 : vector<32x32xf32>
    %162 = arith.truncf %161 : vector<32x32xf32> to vector<32x32xbf16>
    %c1_94 = arith.constant 1 : index
    %c0_95 = arith.constant 0 : index
    %c0_96 = arith.constant 0 : index
    %c0_97 = arith.constant 0 : index
    %163 = vector.load %arg3[%c1_94, %c0_95, %c0_96, %c0_97] : memref<3x5x32x32xbf16, #tpu.memory_space<vmem>>, vector<1x1x32x32xbf16>
    %164 = vector.shape_cast %163 : vector<1x1x32x32xbf16> to vector<32x32xbf16>
    %cst_98 = arith.constant dense<0.000000e+00> : vector<32x32xf32>
    %165 = tpu.matmul %162, %164, %cst_98 {dimension_numbers = #tpu.dot_dimension_numbers<[1], [0], [0], [1], [0, 0, 1, 1], [], []>} : vector<32x32xbf16>, vector<32x32xbf16>, vector<32x32xf32> -> vector<32x32xf32>
    %166 = arith.addf %158, %165 : vector<32x32xf32>
    %c1_i32_99 = arith.constant 1 : i32
    %167 = tpu.dynamic_rotate %154 by %c1_i32_99 dim 0 : vector<32x32xf32>, i32 -> vector<32x32xf32>
    %168 = vector.broadcast %40 : vector<32x1xf32> to vector<32x32xf32>
    %169 = arith.mulf %167, %168 : vector<32x32xf32>
    %170 = arith.truncf %169 : vector<32x32xf32> to vector<32x32xbf16>
    %c1_100 = arith.constant 1 : index
    %c1_101 = arith.constant 1 : index
    %c0_102 = arith.constant 0 : index
    %c0_103 = arith.constant 0 : index
    %171 = vector.load %arg3[%c1_100, %c1_101, %c0_102, %c0_103] : memref<3x5x32x32xbf16, #tpu.memory_space<vmem>>, vector<1x1x32x32xbf16>
    %172 = vector.shape_cast %171 : vector<1x1x32x32xbf16> to vector<32x32xbf16>
    %cst_104 = arith.constant dense<0.000000e+00> : vector<32x32xf32>
    %173 = tpu.matmul %170, %172, %cst_104 {dimension_numbers = #tpu.dot_dimension_numbers<[1], [0], [0], [1], [0, 0, 1, 1], [], []>} : vector<32x32xbf16>, vector<32x32xbf16>, vector<32x32xf32> -> vector<32x32xf32>
    %174 = arith.addf %166, %173 : vector<32x32xf32>
    %c31_i32_105 = arith.constant 31 : i32
    %175 = tpu.dynamic_rotate %154 by %c31_i32_105 dim 0 : vector<32x32xf32>, i32 -> vector<32x32xf32>
    %176 = vector.broadcast %52 : vector<32x1xf32> to vector<32x32xf32>
    %177 = arith.mulf %175, %176 : vector<32x32xf32>
    %178 = arith.truncf %177 : vector<32x32xf32> to vector<32x32xbf16>
    %c1_106 = arith.constant 1 : index
    %c3_107 = arith.constant 3 : index
    %c0_108 = arith.constant 0 : index
    %c0_109 = arith.constant 0 : index
    %179 = vector.load %arg3[%c1_106, %c3_107, %c0_108, %c0_109] : memref<3x5x32x32xbf16, #tpu.memory_space<vmem>>, vector<1x1x32x32xbf16>
    %180 = vector.shape_cast %179 : vector<1x1x32x32xbf16> to vector<32x32xbf16>
    %cst_110 = arith.constant dense<0.000000e+00> : vector<32x32xf32>
    %181 = tpu.matmul %178, %180, %cst_110 {dimension_numbers = #tpu.dot_dimension_numbers<[1], [0], [0], [1], [0, 0, 1, 1], [], []>} : vector<32x32xbf16>, vector<32x32xbf16>, vector<32x32xf32> -> vector<32x32xf32>
    %182 = arith.addf %174, %181 : vector<32x32xf32>
    %c30_i32_111 = arith.constant 30 : i32
    %183 = tpu.dynamic_rotate %154 by %c30_i32_111 dim 0 : vector<32x32xf32>, i32 -> vector<32x32xf32>
    %184 = vector.broadcast %64 : vector<32x1xf32> to vector<32x32xf32>
    %185 = arith.mulf %183, %184 : vector<32x32xf32>
    %186 = arith.truncf %185 : vector<32x32xf32> to vector<32x32xbf16>
    %c1_112 = arith.constant 1 : index
    %c4_113 = arith.constant 4 : index
    %c0_114 = arith.constant 0 : index
    %c0_115 = arith.constant 0 : index
    %187 = vector.load %arg3[%c1_112, %c4_113, %c0_114, %c0_115] : memref<3x5x32x32xbf16, #tpu.memory_space<vmem>>, vector<1x1x32x32xbf16>
    %188 = vector.shape_cast %187 : vector<1x1x32x32xbf16> to vector<32x32xbf16>
    %cst_116 = arith.constant dense<0.000000e+00> : vector<32x32xf32>
    %189 = tpu.matmul %186, %188, %cst_116 {dimension_numbers = #tpu.dot_dimension_numbers<[1], [0], [0], [1], [0, 0, 1, 1], [], []>} : vector<32x32xbf16>, vector<32x32xbf16>, vector<32x32xf32> -> vector<32x32xf32>
    %190 = arith.addf %182, %189 : vector<32x32xf32>
    %c1_117 = arith.constant 1 : index
    %c0_118 = arith.constant 0 : index
    %c0_119 = arith.constant 0 : index
    %191 = vector.load %arg4[%c1_117, %c0_118, %c0_119] : memref<3x1x32xf32, #tpu.memory_space<vmem>>, vector<1x1x32xf32>
    %192 = vector.shape_cast %191 : vector<1x1x32xf32> to vector<1x32xf32>
    %193 = vector.broadcast %192 : vector<1x32xf32> to vector<32x32xf32>
    %194 = arith.addf %190, %193 : vector<32x32xf32>
    %cst_120 = arith.constant 1.000000e-01 : f32
    %195 = vector.broadcast %cst_120 : f32 to vector<32x32xf32>
    %196 = arith.mulf %195, %194 : vector<32x32xf32>
    %197 = arith.maximumf %194, %196 : vector<32x32xf32>
    %198 = arith.truncf %197 : vector<32x32xf32> to vector<32x32xbf16>
    %c1_121 = arith.constant 1 : index
    %c2_122 = arith.constant 2 : index
    %c0_123 = arith.constant 0 : index
    %c0_124 = arith.constant 0 : index
    %199 = vector.load %arg5[%c1_121, %c2_122, %c0_123, %c0_124] : memref<3x5x32x32xbf16, #tpu.memory_space<vmem>>, vector<1x1x32x32xbf16>
    %200 = vector.shape_cast %199 : vector<1x1x32x32xbf16> to vector<32x32xbf16>
    %cst_125 = arith.constant dense<0.000000e+00> : vector<32x32xf32>
    %201 = tpu.matmul %198, %200, %cst_125 {dimension_numbers = #tpu.dot_dimension_numbers<[1], [0], [0], [1], [0, 0, 1, 1], [], []>} : vector<32x32xbf16>, vector<32x32xbf16>, vector<32x32xf32> -> vector<32x32xf32>
    %c2_i32_126 = arith.constant 2 : i32
    %202 = tpu.dynamic_rotate %197 by %c2_i32_126 dim 0 : vector<32x32xf32>, i32 -> vector<32x32xf32>
    %203 = vector.broadcast %28 : vector<32x1xf32> to vector<32x32xf32>
    %204 = arith.mulf %202, %203 : vector<32x32xf32>
    %205 = arith.truncf %204 : vector<32x32xf32> to vector<32x32xbf16>
    %c1_127 = arith.constant 1 : index
    %c0_128 = arith.constant 0 : index
    %c0_129 = arith.constant 0 : index
    %c0_130 = arith.constant 0 : index
    %206 = vector.load %arg5[%c1_127, %c0_128, %c0_129, %c0_130] : memref<3x5x32x32xbf16, #tpu.memory_space<vmem>>, vector<1x1x32x32xbf16>
    %207 = vector.shape_cast %206 : vector<1x1x32x32xbf16> to vector<32x32xbf16>
    %cst_131 = arith.constant dense<0.000000e+00> : vector<32x32xf32>
    %208 = tpu.matmul %205, %207, %cst_131 {dimension_numbers = #tpu.dot_dimension_numbers<[1], [0], [0], [1], [0, 0, 1, 1], [], []>} : vector<32x32xbf16>, vector<32x32xbf16>, vector<32x32xf32> -> vector<32x32xf32>
    %209 = arith.addf %201, %208 : vector<32x32xf32>
    %c1_i32_132 = arith.constant 1 : i32
    %210 = tpu.dynamic_rotate %197 by %c1_i32_132 dim 0 : vector<32x32xf32>, i32 -> vector<32x32xf32>
    %211 = vector.broadcast %40 : vector<32x1xf32> to vector<32x32xf32>
    %212 = arith.mulf %210, %211 : vector<32x32xf32>
    %213 = arith.truncf %212 : vector<32x32xf32> to vector<32x32xbf16>
    %c1_133 = arith.constant 1 : index
    %c1_134 = arith.constant 1 : index
    %c0_135 = arith.constant 0 : index
    %c0_136 = arith.constant 0 : index
    %214 = vector.load %arg5[%c1_133, %c1_134, %c0_135, %c0_136] : memref<3x5x32x32xbf16, #tpu.memory_space<vmem>>, vector<1x1x32x32xbf16>
    %215 = vector.shape_cast %214 : vector<1x1x32x32xbf16> to vector<32x32xbf16>
    %cst_137 = arith.constant dense<0.000000e+00> : vector<32x32xf32>
    %216 = tpu.matmul %213, %215, %cst_137 {dimension_numbers = #tpu.dot_dimension_numbers<[1], [0], [0], [1], [0, 0, 1, 1], [], []>} : vector<32x32xbf16>, vector<32x32xbf16>, vector<32x32xf32> -> vector<32x32xf32>
    %217 = arith.addf %209, %216 : vector<32x32xf32>
    %c31_i32_138 = arith.constant 31 : i32
    %218 = tpu.dynamic_rotate %197 by %c31_i32_138 dim 0 : vector<32x32xf32>, i32 -> vector<32x32xf32>
    %219 = vector.broadcast %52 : vector<32x1xf32> to vector<32x32xf32>
    %220 = arith.mulf %218, %219 : vector<32x32xf32>
    %221 = arith.truncf %220 : vector<32x32xf32> to vector<32x32xbf16>
    %c1_139 = arith.constant 1 : index
    %c3_140 = arith.constant 3 : index
    %c0_141 = arith.constant 0 : index
    %c0_142 = arith.constant 0 : index
    %222 = vector.load %arg5[%c1_139, %c3_140, %c0_141, %c0_142] : memref<3x5x32x32xbf16, #tpu.memory_space<vmem>>, vector<1x1x32x32xbf16>
    %223 = vector.shape_cast %222 : vector<1x1x32x32xbf16> to vector<32x32xbf16>
    %cst_143 = arith.constant dense<0.000000e+00> : vector<32x32xf32>
    %224 = tpu.matmul %221, %223, %cst_143 {dimension_numbers = #tpu.dot_dimension_numbers<[1], [0], [0], [1], [0, 0, 1, 1], [], []>} : vector<32x32xbf16>, vector<32x32xbf16>, vector<32x32xf32> -> vector<32x32xf32>
    %225 = arith.addf %217, %224 : vector<32x32xf32>
    %c30_i32_144 = arith.constant 30 : i32
    %226 = tpu.dynamic_rotate %197 by %c30_i32_144 dim 0 : vector<32x32xf32>, i32 -> vector<32x32xf32>
    %227 = vector.broadcast %64 : vector<32x1xf32> to vector<32x32xf32>
    %228 = arith.mulf %226, %227 : vector<32x32xf32>
    %229 = arith.truncf %228 : vector<32x32xf32> to vector<32x32xbf16>
    %c1_145 = arith.constant 1 : index
    %c4_146 = arith.constant 4 : index
    %c0_147 = arith.constant 0 : index
    %c0_148 = arith.constant 0 : index
    %230 = vector.load %arg5[%c1_145, %c4_146, %c0_147, %c0_148] : memref<3x5x32x32xbf16, #tpu.memory_space<vmem>>, vector<1x1x32x32xbf16>
    %231 = vector.shape_cast %230 : vector<1x1x32x32xbf16> to vector<32x32xbf16>
    %cst_149 = arith.constant dense<0.000000e+00> : vector<32x32xf32>
    %232 = tpu.matmul %229, %231, %cst_149 {dimension_numbers = #tpu.dot_dimension_numbers<[1], [0], [0], [1], [0, 0, 1, 1], [], []>} : vector<32x32xbf16>, vector<32x32xbf16>, vector<32x32xf32> -> vector<32x32xf32>
    %233 = arith.addf %225, %232 : vector<32x32xf32>
    %c1_150 = arith.constant 1 : index
    %c0_151 = arith.constant 0 : index
    %c0_152 = arith.constant 0 : index
    %234 = vector.load %arg6[%c1_150, %c0_151, %c0_152] : memref<3x1x32xf32, #tpu.memory_space<vmem>>, vector<1x1x32xf32>
    %235 = vector.shape_cast %234 : vector<1x1x32xf32> to vector<1x32xf32>
    %236 = vector.broadcast %235 : vector<1x32xf32> to vector<32x32xf32>
    %237 = arith.addf %233, %236 : vector<32x32xf32>
    %238 = arith.addf %154, %237 : vector<32x32xf32>
    %239 = arith.truncf %238 : vector<32x32xf32> to vector<32x32xbf16>
    %c2_153 = arith.constant 2 : index
    %c2_154 = arith.constant 2 : index
    %c0_155 = arith.constant 0 : index
    %c0_156 = arith.constant 0 : index
    %240 = vector.load %arg3[%c2_153, %c2_154, %c0_155, %c0_156] : memref<3x5x32x32xbf16, #tpu.memory_space<vmem>>, vector<1x1x32x32xbf16>
    %241 = vector.shape_cast %240 : vector<1x1x32x32xbf16> to vector<32x32xbf16>
    %cst_157 = arith.constant dense<0.000000e+00> : vector<32x32xf32>
    %242 = tpu.matmul %239, %241, %cst_157 {dimension_numbers = #tpu.dot_dimension_numbers<[1], [0], [0], [1], [0, 0, 1, 1], [], []>} : vector<32x32xbf16>, vector<32x32xbf16>, vector<32x32xf32> -> vector<32x32xf32>
    %c2_i32_158 = arith.constant 2 : i32
    %243 = tpu.dynamic_rotate %238 by %c2_i32_158 dim 0 : vector<32x32xf32>, i32 -> vector<32x32xf32>
    %244 = vector.broadcast %28 : vector<32x1xf32> to vector<32x32xf32>
    %245 = arith.mulf %243, %244 : vector<32x32xf32>
    %246 = arith.truncf %245 : vector<32x32xf32> to vector<32x32xbf16>
    %c2_159 = arith.constant 2 : index
    %c0_160 = arith.constant 0 : index
    %c0_161 = arith.constant 0 : index
    %c0_162 = arith.constant 0 : index
    %247 = vector.load %arg3[%c2_159, %c0_160, %c0_161, %c0_162] : memref<3x5x32x32xbf16, #tpu.memory_space<vmem>>, vector<1x1x32x32xbf16>
    %248 = vector.shape_cast %247 : vector<1x1x32x32xbf16> to vector<32x32xbf16>
    %cst_163 = arith.constant dense<0.000000e+00> : vector<32x32xf32>
    %249 = tpu.matmul %246, %248, %cst_163 {dimension_numbers = #tpu.dot_dimension_numbers<[1], [0], [0], [1], [0, 0, 1, 1], [], []>} : vector<32x32xbf16>, vector<32x32xbf16>, vector<32x32xf32> -> vector<32x32xf32>
    %250 = arith.addf %242, %249 : vector<32x32xf32>
    %c1_i32_164 = arith.constant 1 : i32
    %251 = tpu.dynamic_rotate %238 by %c1_i32_164 dim 0 : vector<32x32xf32>, i32 -> vector<32x32xf32>
    %252 = vector.broadcast %40 : vector<32x1xf32> to vector<32x32xf32>
    %253 = arith.mulf %251, %252 : vector<32x32xf32>
    %254 = arith.truncf %253 : vector<32x32xf32> to vector<32x32xbf16>
    %c2_165 = arith.constant 2 : index
    %c1_166 = arith.constant 1 : index
    %c0_167 = arith.constant 0 : index
    %c0_168 = arith.constant 0 : index
    %255 = vector.load %arg3[%c2_165, %c1_166, %c0_167, %c0_168] : memref<3x5x32x32xbf16, #tpu.memory_space<vmem>>, vector<1x1x32x32xbf16>
    %256 = vector.shape_cast %255 : vector<1x1x32x32xbf16> to vector<32x32xbf16>
    %cst_169 = arith.constant dense<0.000000e+00> : vector<32x32xf32>
    %257 = tpu.matmul %254, %256, %cst_169 {dimension_numbers = #tpu.dot_dimension_numbers<[1], [0], [0], [1], [0, 0, 1, 1], [], []>} : vector<32x32xbf16>, vector<32x32xbf16>, vector<32x32xf32> -> vector<32x32xf32>
    %258 = arith.addf %250, %257 : vector<32x32xf32>
    %c31_i32_170 = arith.constant 31 : i32
    %259 = tpu.dynamic_rotate %238 by %c31_i32_170 dim 0 : vector<32x32xf32>, i32 -> vector<32x32xf32>
    %260 = vector.broadcast %52 : vector<32x1xf32> to vector<32x32xf32>
    %261 = arith.mulf %259, %260 : vector<32x32xf32>
    %262 = arith.truncf %261 : vector<32x32xf32> to vector<32x32xbf16>
    %c2_171 = arith.constant 2 : index
    %c3_172 = arith.constant 3 : index
    %c0_173 = arith.constant 0 : index
    %c0_174 = arith.constant 0 : index
    %263 = vector.load %arg3[%c2_171, %c3_172, %c0_173, %c0_174] : memref<3x5x32x32xbf16, #tpu.memory_space<vmem>>, vector<1x1x32x32xbf16>
    %264 = vector.shape_cast %263 : vector<1x1x32x32xbf16> to vector<32x32xbf16>
    %cst_175 = arith.constant dense<0.000000e+00> : vector<32x32xf32>
    %265 = tpu.matmul %262, %264, %cst_175 {dimension_numbers = #tpu.dot_dimension_numbers<[1], [0], [0], [1], [0, 0, 1, 1], [], []>} : vector<32x32xbf16>, vector<32x32xbf16>, vector<32x32xf32> -> vector<32x32xf32>
    %266 = arith.addf %258, %265 : vector<32x32xf32>
    %c30_i32_176 = arith.constant 30 : i32
    %267 = tpu.dynamic_rotate %238 by %c30_i32_176 dim 0 : vector<32x32xf32>, i32 -> vector<32x32xf32>
    %268 = vector.broadcast %64 : vector<32x1xf32> to vector<32x32xf32>
    %269 = arith.mulf %267, %268 : vector<32x32xf32>
    %270 = arith.truncf %269 : vector<32x32xf32> to vector<32x32xbf16>
    %c2_177 = arith.constant 2 : index
    %c4_178 = arith.constant 4 : index
    %c0_179 = arith.constant 0 : index
    %c0_180 = arith.constant 0 : index
    %271 = vector.load %arg3[%c2_177, %c4_178, %c0_179, %c0_180] : memref<3x5x32x32xbf16, #tpu.memory_space<vmem>>, vector<1x1x32x32xbf16>
    %272 = vector.shape_cast %271 : vector<1x1x32x32xbf16> to vector<32x32xbf16>
    %cst_181 = arith.constant dense<0.000000e+00> : vector<32x32xf32>
    %273 = tpu.matmul %270, %272, %cst_181 {dimension_numbers = #tpu.dot_dimension_numbers<[1], [0], [0], [1], [0, 0, 1, 1], [], []>} : vector<32x32xbf16>, vector<32x32xbf16>, vector<32x32xf32> -> vector<32x32xf32>
    %274 = arith.addf %266, %273 : vector<32x32xf32>
    %c2_182 = arith.constant 2 : index
    %c0_183 = arith.constant 0 : index
    %c0_184 = arith.constant 0 : index
    %275 = vector.load %arg4[%c2_182, %c0_183, %c0_184] : memref<3x1x32xf32, #tpu.memory_space<vmem>>, vector<1x1x32xf32>
    %276 = vector.shape_cast %275 : vector<1x1x32xf32> to vector<1x32xf32>
    %277 = vector.broadcast %276 : vector<1x32xf32> to vector<32x32xf32>
    %278 = arith.addf %274, %277 : vector<32x32xf32>
    %cst_185 = arith.constant 1.000000e-01 : f32
    %279 = vector.broadcast %cst_185 : f32 to vector<32x32xf32>
    %280 = arith.mulf %279, %278 : vector<32x32xf32>
    %281 = arith.maximumf %278, %280 : vector<32x32xf32>
    %282 = arith.truncf %281 : vector<32x32xf32> to vector<32x32xbf16>
    %c2_186 = arith.constant 2 : index
    %c2_187 = arith.constant 2 : index
    %c0_188 = arith.constant 0 : index
    %c0_189 = arith.constant 0 : index
    %283 = vector.load %arg5[%c2_186, %c2_187, %c0_188, %c0_189] : memref<3x5x32x32xbf16, #tpu.memory_space<vmem>>, vector<1x1x32x32xbf16>
    %284 = vector.shape_cast %283 : vector<1x1x32x32xbf16> to vector<32x32xbf16>
    %cst_190 = arith.constant dense<0.000000e+00> : vector<32x32xf32>
    %285 = tpu.matmul %282, %284, %cst_190 {dimension_numbers = #tpu.dot_dimension_numbers<[1], [0], [0], [1], [0, 0, 1, 1], [], []>} : vector<32x32xbf16>, vector<32x32xbf16>, vector<32x32xf32> -> vector<32x32xf32>
    %c2_i32_191 = arith.constant 2 : i32
    %286 = tpu.dynamic_rotate %281 by %c2_i32_191 dim 0 : vector<32x32xf32>, i32 -> vector<32x32xf32>
    %287 = vector.broadcast %28 : vector<32x1xf32> to vector<32x32xf32>
    %288 = arith.mulf %286, %287 : vector<32x32xf32>
    %289 = arith.truncf %288 : vector<32x32xf32> to vector<32x32xbf16>
    %c2_192 = arith.constant 2 : index
    %c0_193 = arith.constant 0 : index
    %c0_194 = arith.constant 0 : index
    %c0_195 = arith.constant 0 : index
    %290 = vector.load %arg5[%c2_192, %c0_193, %c0_194, %c0_195] : memref<3x5x32x32xbf16, #tpu.memory_space<vmem>>, vector<1x1x32x32xbf16>
    %291 = vector.shape_cast %290 : vector<1x1x32x32xbf16> to vector<32x32xbf16>
    %cst_196 = arith.constant dense<0.000000e+00> : vector<32x32xf32>
    %292 = tpu.matmul %289, %291, %cst_196 {dimension_numbers = #tpu.dot_dimension_numbers<[1], [0], [0], [1], [0, 0, 1, 1], [], []>} : vector<32x32xbf16>, vector<32x32xbf16>, vector<32x32xf32> -> vector<32x32xf32>
    %293 = arith.addf %285, %292 : vector<32x32xf32>
    %c1_i32_197 = arith.constant 1 : i32
    %294 = tpu.dynamic_rotate %281 by %c1_i32_197 dim 0 : vector<32x32xf32>, i32 -> vector<32x32xf32>
    %295 = vector.broadcast %40 : vector<32x1xf32> to vector<32x32xf32>
    %296 = arith.mulf %294, %295 : vector<32x32xf32>
    %297 = arith.truncf %296 : vector<32x32xf32> to vector<32x32xbf16>
    %c2_198 = arith.constant 2 : index
    %c1_199 = arith.constant 1 : index
    %c0_200 = arith.constant 0 : index
    %c0_201 = arith.constant 0 : index
    %298 = vector.load %arg5[%c2_198, %c1_199, %c0_200, %c0_201] : memref<3x5x32x32xbf16, #tpu.memory_space<vmem>>, vector<1x1x32x32xbf16>
    %299 = vector.shape_cast %298 : vector<1x1x32x32xbf16> to vector<32x32xbf16>
    %cst_202 = arith.constant dense<0.000000e+00> : vector<32x32xf32>
    %300 = tpu.matmul %297, %299, %cst_202 {dimension_numbers = #tpu.dot_dimension_numbers<[1], [0], [0], [1], [0, 0, 1, 1], [], []>} : vector<32x32xbf16>, vector<32x32xbf16>, vector<32x32xf32> -> vector<32x32xf32>
    %301 = arith.addf %293, %300 : vector<32x32xf32>
    %c31_i32_203 = arith.constant 31 : i32
    %302 = tpu.dynamic_rotate %281 by %c31_i32_203 dim 0 : vector<32x32xf32>, i32 -> vector<32x32xf32>
    %303 = vector.broadcast %52 : vector<32x1xf32> to vector<32x32xf32>
    %304 = arith.mulf %302, %303 : vector<32x32xf32>
    %305 = arith.truncf %304 : vector<32x32xf32> to vector<32x32xbf16>
    %c2_204 = arith.constant 2 : index
    %c3_205 = arith.constant 3 : index
    %c0_206 = arith.constant 0 : index
    %c0_207 = arith.constant 0 : index
    %306 = vector.load %arg5[%c2_204, %c3_205, %c0_206, %c0_207] : memref<3x5x32x32xbf16, #tpu.memory_space<vmem>>, vector<1x1x32x32xbf16>
    %307 = vector.shape_cast %306 : vector<1x1x32x32xbf16> to vector<32x32xbf16>
    %cst_208 = arith.constant dense<0.000000e+00> : vector<32x32xf32>
    %308 = tpu.matmul %305, %307, %cst_208 {dimension_numbers = #tpu.dot_dimension_numbers<[1], [0], [0], [1], [0, 0, 1, 1], [], []>} : vector<32x32xbf16>, vector<32x32xbf16>, vector<32x32xf32> -> vector<32x32xf32>
    %309 = arith.addf %301, %308 : vector<32x32xf32>
    %c30_i32_209 = arith.constant 30 : i32
    %310 = tpu.dynamic_rotate %281 by %c30_i32_209 dim 0 : vector<32x32xf32>, i32 -> vector<32x32xf32>
    %311 = vector.broadcast %64 : vector<32x1xf32> to vector<32x32xf32>
    %312 = arith.mulf %310, %311 : vector<32x32xf32>
    %313 = arith.truncf %312 : vector<32x32xf32> to vector<32x32xbf16>
    %c2_210 = arith.constant 2 : index
    %c4_211 = arith.constant 4 : index
    %c0_212 = arith.constant 0 : index
    %c0_213 = arith.constant 0 : index
    %314 = vector.load %arg5[%c2_210, %c4_211, %c0_212, %c0_213] : memref<3x5x32x32xbf16, #tpu.memory_space<vmem>>, vector<1x1x32x32xbf16>
    %315 = vector.shape_cast %314 : vector<1x1x32x32xbf16> to vector<32x32xbf16>
    %cst_214 = arith.constant dense<0.000000e+00> : vector<32x32xf32>
    %316 = tpu.matmul %313, %315, %cst_214 {dimension_numbers = #tpu.dot_dimension_numbers<[1], [0], [0], [1], [0, 0, 1, 1], [], []>} : vector<32x32xbf16>, vector<32x32xbf16>, vector<32x32xf32> -> vector<32x32xf32>
    %317 = arith.addf %309, %316 : vector<32x32xf32>
    %c2_215 = arith.constant 2 : index
    %c0_216 = arith.constant 0 : index
    %c0_217 = arith.constant 0 : index
    %318 = vector.load %arg6[%c2_215, %c0_216, %c0_217] : memref<3x1x32xf32, #tpu.memory_space<vmem>>, vector<1x1x32xf32>
    %319 = vector.shape_cast %318 : vector<1x1x32xf32> to vector<1x32xf32>
    %320 = vector.broadcast %319 : vector<1x32xf32> to vector<32x32xf32>
    %321 = arith.addf %317, %320 : vector<32x32xf32>
    %322 = arith.addf %238, %321 : vector<32x32xf32>
    %323 = vector.shape_cast %322 : vector<32x32xf32> to vector<2x16x32xf32>
    %cst_218 = arith.constant dense<0.000000e+00> : vector<2x32xf32>
    %324 = vector.multi_reduction <add>, %323, %cst_218 [1] : vector<2x16x32xf32> to vector<2x32xf32>
    %cst_219 = arith.constant 6.250000e-02 : f32
    %325 = vector.broadcast %cst_219 : f32 to vector<2x32xf32>
    %326 = arith.mulf %324, %325 : vector<2x32xf32>
    %c0_220 = arith.constant 0 : index
    %c0_221 = arith.constant 0 : index
    %327 = vector.load %arg7[%c0_220, %c0_221] : memref<32x32xf32, #tpu.memory_space<vmem>>, vector<32x32xf32>
    %cst_222 = arith.constant dense<0.000000e+00> : vector<2x32xf32>
    %328 = tpu.matmul %326, %327, %cst_222 {dimension_numbers = #tpu.dot_dimension_numbers<[1], [0], [0], [1], [0, 0, 1, 1], [], []>} : vector<2x32xf32>, vector<32x32xf32>, vector<2x32xf32> -> vector<2x32xf32>
    %c0_223 = arith.constant 0 : index
    %c0_224 = arith.constant 0 : index
    %329 = vector.load %arg8[%c0_223, %c0_224] : memref<1x32xf32, #tpu.memory_space<vmem>>, vector<1x32xf32>
    %330 = vector.broadcast %329 : vector<1x32xf32> to vector<2x32xf32>
    %331 = arith.addf %328, %330 : vector<2x32xf32>
    %c0_225 = arith.constant 0 : index
    %c0_226 = arith.constant 0 : index
    %332 = vector.load %arg9[%c0_225, %c0_226] : memref<2x32xf32, #tpu.memory_space<vmem>>, vector<2x32xf32>
    tpu.vector_store %arg9[%c0_225, %c0_226], %331 {strides = array<i32>} : memref<2x32xf32, #tpu.memory_space<vmem>>, vector<2x32xf32>,
    return
  }
}

</mosaic_0001>

<bundles_post_ra>
// kernel: tpu_custom_call.1
= control target key start
LH: loop header
LB: loop body
LE: loop exit
PB: predicated region body
PF: predicated region fallthrough
CT: control target
= control target key end

     0   :  { %14 = vsyncpa [#allocation3], 0  ;;  %s4458_s0 = inlined_call_operand.vmem [shape: bf16[32,16], index: 0, kind: input, shape index: {}]   ;;  %s4459_s1 = inlined_call_operand.vmem [shape: bf16[16,32], index: 1, kind: input, shape index: {}]   ;;  %s4460_s2 = inlined_call_operand.vmem [shape: f32[1,32], index: 2, kind: input, shape index: {}]   ;;  %s4461_s3 = inlined_call_operand.hbm [shape: bf16[3,5,32,32], index: 3, kind: input, shape index: {}]   ;;  %s4462_s4 = inlined_call_operand.vmem [shape: f32[3,1,32], index: 4, kind: input, shape index: {}]   ;;  %s4463_s5 = inlined_call_operand.hbm [shape: bf16[3,5,32,32], index: 5, kind: input, shape index: {}]   ;;  %s4464_s6 = inlined_call_operand.vmem [shape: f32[3,1,32], index: 6, kind: input, shape index: {}]   ;;  %s4465_s7 = inlined_call_operand.vmem [shape: f32[32,32], index: 7, kind: input, shape index: {}]   ;;  %s4466_s8 = inlined_call_operand.vmem [shape: f32[1,32], index: 8, kind: input, shape index: {}]   ;;  %s4467_s9 = inlined_call_operand.hbm [shape: f32[2,32], index: 9, kind: output, shape index: {}]  }
   0x1   :  { %15 = vsyncpa [#allocation6], 0 }
   0x2   :  { %16 = vsyncpa [#allocation4], 0  ;;  %s3862_s30 = smov [#allocation2]   ;;  %s3790_s13 = scalar_lea.hbm %s4461_s3, 3840 }
   0x3   :  { %s28_s10 = sshll.u32 %s3862_s30, 4  ;;  %p3791_p0 = scmp.ne.s32.totalorder %s4461_s3, %s3790_s13  ;;  %s29_s10 = int_to_ptr.vmem [resolvable:$true] %s28_s10 }
   0x4   :  { %p3794_p1 = scmp.lt.u32.totalorder %s3790_s13, %s4461_s3 }
   0x6   :  { %p3796_p2 = pnand %p3794_p1, %p3791_p0 }
   0x8   :  { %3799 = shalt.err (!%p3796_p2)
}
   0x9   :  { %s3800_s18 = scalar_lea.vmem %s29_s10, 3840  ;;  %p3805_p4 = scmp.lt.s32.totalorder %s29_s10, %s29_s10 }
   0xa   :  { %p3801_p3 = scmp.ne.s32.totalorder %s29_s10, %s3800_s18  ;;  %p3806_p5 = scmp.lt.s32.totalorder %s3800_s18, %s3800_s18 }
   0xc   :  { %p3807_p6 = por %p3806_p5, %p3805_p4 }
   0xe   :  { %p3808_p7 = pnand %p3807_p6, %p3801_p3 }
  0x10   :  { %3811 = shalt.err (!%p3808_p7)
}
  0x11   :  { %s3863_s19 = smov 64   ;;  %s3864_s20 = smov 4  }
  0x12   :  { %34 = dma.hbm_to_vmem [thread:$0]  %s4461_s3, 3840, %s29_s10, [#allocation3], %s3863_s19, %s3863_s19, %s3864_s20  }
  0x13   :  { %s3865_s23 = smov [#allocation5]   ;;  %s3812_s27 = scalar_lea.hbm %s4463_s5, 3840 }
  0x14   :  { %s42_s24 = sshll.u32 %s3865_s23, 4  ;;  %p3813_p8 = scmp.ne.s32.totalorder %s4463_s5, %s3812_s27  ;;  %s43_s24 = int_to_ptr.vmem [resolvable:$true] %s42_s24 }
  0x15   :  { %p3816_p9 = scmp.lt.u32.totalorder %s3812_s27, %s4463_s5 }
  0x17   :  { %p3818_p10 = pnand %p3816_p9, %p3813_p8 }
  0x19   :  { %3821 = shalt.err (!%p3818_p10)
}
  0x1a   :  { %s3822_s12 = scalar_lea.vmem %s43_s24, 3840  ;;  %p3827_p12 = scmp.lt.s32.totalorder %s43_s24, %s43_s24 }
  0x1b   :  { %p3823_p11 = scmp.ne.s32.totalorder %s43_s24, %s3822_s12  ;;  %p3828_p13 = scmp.lt.s32.totalorder %s3822_s12, %s3822_s12 }
  0x1d   :  { %p3829_p0 = por %p3828_p13, %p3827_p12 }
  0x1f   :  { %p3830_p1 = pnand %p3829_p0, %p3823_p11 }
  0x21   :  { %3833 = shalt.err (!%p3830_p1)
}
  0x22   :  { %48 = dma.hbm_to_vmem [thread:$0]  %s4463_s5, 3840, %s43_s24, [#allocation6], %s3863_s19, %s3863_s19, %s3864_s20  }
  0x23   :  { %3856 = dma.done.wait [#allocation3], 3840  }
  0x24   :  { %3857 = vsyncadd [#allocation3], 4294963456 }
  0x25   :  { %3858 = dma.done.wait [#allocation6], 3840  }
  0x26   :  { %3859 = vsyncadd [#allocation6], 4294963456  ;;  %v3727_v0 = vld [vmem:[%s4459_s1] sm:$0xff]   ;;  %vm224_vm0 = vcmask 130048   ;;  %v3729_v2 = vld [vmem:[%s4458_s0 + $0x8] sm:$0xff]   ;;  %v62_v6 = vlaneseq  ;;  %v3866_v23 = vmov 0.0  }
  0x27   :  { %v3728_v1 = vld [vmem:[%s4458_s0] sm:$0xff]   ;;  %3360 = vmatprep.subr.bf16.mxu0 %v3727_v0  ;;  %v3730_v3 = vld [vmem:[#allocation2] sm:$0xff]   ;;  %vm318_vm4 = vcmask 261120   ;;  %v3734_v43 = vld [vmem:[#allocation2 + $0x10] sm:$0xff]   ;;  %vm3868_vm14 = vmmov 0   ;;  %vm3002_vm15 = vcmask 1041409  }
  0x28   :  { %3361 = vmatpush3.bf16.msra.mxu0 %v3727_v0  ;;  %3362 = vmatprep.mubr.msk.bf16.mxu0 %vm224_vm0, %v3728_v1  ;;  %v3731_v4 = vld [vmem:[#allocation2 + $0x8] sm:$0xff]   ;;  %v3732_v5 = vld [vmem:[#allocation2 + $0x20] sm:$0xff]   ;;  %v3953_v7 = vshrl.u32 %v62_v6, 7  ;;  %v3735_v53 = vld [vmem:[#allocation2 + $0x18] sm:$0xff]   ;;  %s3869_s14 = smov [#allocation7]  }
  0x29   :  { %3366 = vmatprep.subr.bf16.mxu1 %v3730_v3  ;;  %v3094_v12 = vld [vmem:[%s4460_s2] ss:$0 sm:$0xff]  ;;  %v3736_v58 = vld [vmem:[#allocation2 + $0x30] sm:$0xff]   ;;  %s3084_s15 = sshll.u32 %s3869_s14, 4  ;;  %s3085_s15 = int_to_ptr.vmem [resolvable:$true] %s3084_s15 }
  0x2a   :  { %3367 = vmatpush3.bf16.msra.mxu1 %v3730_v3  ;;  %v65_v8 = vadd.s32 16, %v3953_v7  ;;  %v71_v9 = vand.u32 15, %v3953_v7  ;;  %vm291_vm3 = vcmp.lt.s32.totalorder %v3953_v7, 2  ;;  %v3733_v38 = vld [vmem:[#allocation2 + $0x28] sm:$0xff]   ;;  %vm445_vm6 = vcmp.lt.s32.totalorder %v3953_v7, 1  ;;  %s3834_s16 = scalar_lea.vmem %s3085_s15, 32  ;;  %p3839_p3 = scmp.lt.s32.totalorder %s3085_s15, %s3085_s15 }
  0x2b   :  { %3363 = vmatmul.mubr.msk.bf16.vlgmr.msra.gmra.mrb[0].mxu0 %vm224_vm0, %v3729_v2  ;;  %3368 = vmatprep.subr.bf16.mxu1 %v3731_v4  ;;  %v64_v42 = vadd.s32 8, %v3953_v7  ;;  %v66_v56 = vadd.s32 24, %v3953_v7  ;;  %vm536_vm8 = vcmp.lt.s32.totalorder %v3953_v7, 7  ;;  %vm627_vm11 = vcmp.lt.s32.totalorder %v3953_v7, 6  ;;  %v3787_v7 = vld [vmem:[#allocation5 + $0xd8] sm:$0xff]   ;;  %p3835_p2 = scmp.ne.s32.totalorder %s3085_s15, %s3834_s16  ;;  %p3840_p4 = scmp.lt.s32.totalorder %s3834_s16, %s3834_s16 }
  0x2c   :  { %v85_v10 = vand.u32 15, %v65_v8  ;;  %v115_v11 = vadd.s32 4294967294, %v71_v9  ;;  %v135_v34 = vadd.s32 4294967295, %v71_v9  ;;  %vm3076_vm0 = vcmask 254976  }
  0x2d   :  { %v78_v47 = vand.u32 15, %v64_v42  ;;  %v92_v0 = vand.u32 15, %v66_v56  ;;  %v3740_v42 = vld [vmem:[#allocation5] sm:$0xff]   ;;  %p3841_p5 = por %p3840_p4, %p3839_p3 }
  0x2e   :  { %3369 = vmatpush3.bf16.msra.mxu1 %v3731_v4  ;;  %v117_v13 = vadd.s32 4294967294, %v85_v10  ;;  %vm119_vm1 = vcmp.ge.s32.totalorder %v115_v11, 0  ;;  %vm139_vm5 = vcmp.ge.s32.totalorder %v135_v34, 0  ;;  %v137_v49 = vadd.s32 4294967295, %v85_v10  ;;  %v3737_v10 = vld [vmem:[#allocation2 + $0x38] sm:$0xff]   ;;  %v3739_v34 = vld [vmem:[#allocation2 + $0x48] sm:$0xff]   ;;  %3406 = vmatprep.subr.bf16.mxu0 %v3740_v42 }
  0x2f   :  { %3374 = vmatprep.subr.bf16.mxu1 %v3732_v5  ;;  %v3971_v24 = vsel %vm119_vm1, 1.0, %v3866_v23  ;;  %v3999_v44 = vsel %vm139_vm5, 1.0, %v3866_v23  ;;  %v156_v51 = vadd.s32 1, %v78_v47  ;;  %v158_v4 = vadd.s32 1, %v92_v0  ;;  %3407 = vmatpush3.bf16.msra.mxu0 %v3740_v42  ;;  %p3842_p6 = pnand %p3841_p5, %p3835_p2 }
  0x30   :  { %vm121_vm2 = vcmp.ge.s32.totalorder %v117_v13, 0  ;;  %vm141_vm7 = vcmp.ge.s32.totalorder %v137_v49, 0  ;;  %v176_v6 = vadd.s32 2, %v78_v47 }
  0x31   :  { %v3976_v27 = vsel %vm121_vm2, 1.0, %v3866_v23  ;;  %vm164_vm9 = vcmp.lt.s32.totalorder %v156_v51, 16  ;;  %v4017_v60 = vsel %vm141_vm7, 1.0, %v3866_v23  ;;  %vm166_vm10 = vcmp.lt.s32.totalorder %v158_v4, 16 }
  0x32   :  { %v4022_v62 = vsel %vm164_vm9, 1.0, %v3866_v23  ;;  %vm184_vm12 = vcmp.lt.s32.totalorder %v176_v6, 16 }
  0xfe   :  { %v3364_v14 = vpop.f32.mrb[0].mxu0 }
  0xff   :  { %v265_v15 = vpop.f32.mrb[1].mxu0  ;;  %v3960_v16 = vadd.f32 %v3364_v14, %v3094_v12  ;;  %v3738_v14 = vld [vmem:[#allocation2 + $0x40] sm:$0xff]  }
 0x100   :  { %v3962_v17 = vadd.f32 %v3094_v12, %v265_v15  ;;  %v3365_v18 = vpop.f32.mrb[2].mxu0 }
 0x101   :  { %v3964_v19 = vadd.f32 %v3365_v18, %v3094_v12  ;;  %v268_v20 = vpop.f32.mrb[3].mxu0  ;;  %v289_v28 = vrot.slane %v3960_v16, 6  ;;  %v443_v57 = vrot.slane %v3960_v16, 7  ;;  %v534_v59 = vrot.slane %v3960_v16, 1 }
 0x102   :  { %v3966_v21 = vadd.f32 %v3094_v12, %v268_v20  ;;  %v287_v22 = vrot.slane %v3962_v17, 6  ;;  %v441_v40 = vrot.slane %v3962_v17, 7  ;;  %v532_v3 = vrot.slane %v3962_v17, 1 }
 0x103   :  { %v290_v25 = vrot.slane %v3964_v19, 6  ;;  %v444_v41 = vrot.slane %v3964_v19, 7  ;;  %v281_v52 = vpack.c.bf16 %v3964_v19, %v3960_v16  ;;  %v535_v12 = vrot.slane %v3964_v19, 1 }
 0x104   :  { %v288_v26 = vrot.slane %v3966_v21, 6  ;;  %v280_v39 = vpack.c.bf16 %v3966_v21, %v3962_v17  ;;  %v442_v45 = vrot.slane %v3966_v21, 7  ;;  %v533_v55 = vrot.slane %v3966_v21, 1 }
 0x105   :  { %v295_v29 = vsel %vm291_vm3, %v290_v25, %v287_v22  ;;  %v292_v36 = vsel %vm291_vm3, %v289_v28, %v290_v25  ;;  %v449_v46 = vsel %vm445_vm6, %v444_v41, %v441_v40  ;;  %v624_v13 = vrot.slane %v3966_v21, 2 }
 0x106   :  { %v294_v30 = vsel %vm291_vm3, %v287_v22, %v288_v26  ;;  %v296_v31 = vmul.f32 %v295_v29, %v3971_v24  ;;  %v293_v32 = vsel %vm291_vm3, %v288_v26, %v289_v28  ;;  %v450_v48 = vmul.f32 %v449_v46, %v3999_v44  ;;  %v3120_v46 = vld [vmem:[%s4462_s4] ss:$0 sm:$0xff] }
 0x107   :  { %v298_v33 = vmul.f32 %v293_v32, %v3976_v27  ;;  %v448_v50 = vsel %vm445_vm6, %v441_v40, %v442_v45  ;;  %v447_v61 = vsel %vm445_vm6, %v442_v45, %v443_v57  ;;  %v538_v63 = vsel %vm536_vm8, %v533_v55, %v534_v59  ;;  %v3742_v45 = vld [vmem:[#allocation5 + $0x20] sm:$0xff]  }
 0x108   :  { %v300_v35 = vpack.c.bf16 %v294_v30, %v296_v31  ;;  %v454_v54 = vpack.c.bf16 %v448_v50, %v450_v48  ;;  %v452_v1 = vmul.f32 %v447_v61, %v4017_v60  ;;  %v542_v2 = vmul.f32 %v538_v63, %v4022_v62 }
 0x109   :  { %v301_v37 = vpack.c.bf16 %v292_v36, %v298_v33  ;;  %v539_v9 = vsel %vm536_vm8, %v532_v3, %v533_v55  ;;  %v625_v15 = vrot.slane %v3960_v16, 2  ;;  %v4040_v18 = vsel %vm166_vm10, 1.0, %v3866_v23 }
 0x10a   :  { %3370 = vmatprep.mubr.msk.bf16.mxu1 %vm318_vm4, %v300_v35  ;;  %v545_v11 = vpack.c.bf16 %v542_v2, %v539_v9  ;;  %v540_v20 = vsel %vm536_vm8, %v535_v12, %v532_v3  ;;  %v4045_v22 = vsel %vm184_vm12, 1.0, %v3866_v23  ;;  %v623_v29 = vrot.slane %v3962_v17, 2 }
 0x10b   :  { %3371 = vmatmul.mubr.msk.bf16.vlgmr.msra.gmra.mrb[0].mxu1 %vm318_vm4, %v301_v37  ;;  %v629_v25 = vsel %vm627_vm11, %v624_v13, %v625_v15  ;;  %v544_v26 = vmul.f32 %v540_v20, %v4040_v18  ;;  %v178_v30 = vadd.s32 2, %v92_v0  ;;  %v537_v31 = vsel %vm536_vm8, %v534_v59, %v535_v12 }
 0x10c   :  { %3375 = vmatpush3.bf16.msra.mxu1 %v3732_v5  ;;  %3378 = vmatprep.mubr.msk.bf16.mxu1 %vm318_vm4, %v280_v39  ;;  %v446_v5 = vsel %vm445_vm6, %v443_v57, %v444_v41  ;;  %v633_v28 = vmul.f32 %v629_v25, %v4045_v22  ;;  %v630_v33 = vsel %vm627_vm11, %v623_v29, %v624_v13  ;;  %v626_v36 = vrot.slane %v3964_v19, 2 }
 0x10d   :  { %3376 = vmatprep.subr.bf16.mxu1 %v3733_v38  ;;  %v455_v8 = vpack.c.bf16 %v446_v5, %v452_v1  ;;  %v546_v32 = vpack.c.bf16 %v544_v26, %v537_v31  ;;  %vm186_vm13 = vcmp.lt.s32.totalorder %v178_v30, 16 }
 0x10e   :  { %v636_v35 = vpack.c.bf16 %v633_v28, %v630_v33  ;;  %v4060_v37 = vsel %vm186_vm13, 1.0, %v3866_v23  ;;  %v628_v40 = vsel %vm627_vm11, %v625_v15, %v626_v36 }
 0x110   :  { %3377 = vmatpush3.bf16.msra.mxu1 %v3733_v38  ;;  %v631_v38 = vsel %vm627_vm11, %v626_v36, %v623_v29 }
 0x111   :  { %3382 = vmatprep.subr.bf16.mxu1 %v3734_v43  ;;  %v635_v39 = vmul.f32 %v631_v38, %v4060_v37 }
 0x113   :  { %v637_v41 = vpack.c.bf16 %v635_v39, %v628_v40 }
 0x117   :  { %3379 = vmatmul.mubr.msk.bf16.vlgmr.msra.gmra.mrb[0].mxu1 %vm318_vm4, %v281_v52 }
 0x118   :  { %3383 = vmatpush3.bf16.msra.mxu1 %v3734_v43  ;;  %3386 = vmatprep.mubr.msk.bf16.mxu1 %vm318_vm4, %v454_v54  ;;  %v3741_v43 = vld [vmem:[#allocation5 + $0x8] sm:$0xff]  }
 0x119   :  { %3384 = vmatprep.subr.bf16.mxu1 %v3735_v53  ;;  %3408 = vmatprep.subr.bf16.mxu0 %v3741_v43 }
 0x11a   :  { %3409 = vmatpush3.bf16.msra.mxu0 %v3741_v43  ;;  %v3743_v43 = vld [vmem:[#allocation5 + $0x28] sm:$0xff]  }
 0x11b   :  { %3414 = vmatprep.subr.bf16.mxu0 %v3742_v45 }
 0x11c   :  { %3385 = vmatpush3.bf16.msra.mxu1 %v3735_v53 }
 0x11d   :  { %3390 = vmatprep.subr.bf16.mxu1 %v3736_v58 }
 0x123   :  { %3387 = vmatmul.mubr.msk.bf16.vlgmr.msra.gmra.mrb[0].mxu1 %vm318_vm4, %v455_v8 }
 0x124   :  { %3391 = vmatpush3.bf16.msra.mxu1 %v3736_v58  ;;  %3394 = vmatprep.mubr.msk.bf16.mxu1 %vm318_vm4, %v545_v11 }
 0x125   :  { %3392 = vmatprep.subr.bf16.mxu1 %v3737_v10 }
 0x128   :  { %3393 = vmatpush3.bf16.msra.mxu1 %v3737_v10 }
 0x129   :  { %3398 = vmatprep.subr.bf16.mxu1 %v3738_v14 }
 0x12f   :  { %3395 = vmatmul.mubr.msk.bf16.vlgmr.msra.gmra.mrb[0].mxu1 %vm318_vm4, %v546_v32 }
 0x130   :  { %3399 = vmatpush3.bf16.msra.mxu1 %v3738_v14  ;;  %3402 = vmatprep.mubr.msk.bf16.mxu1 %vm318_vm4, %v636_v35 }
 0x131   :  { %3400 = vmatprep.subr.bf16.mxu1 %v3739_v34 }
 0x134   :  { %3401 = vmatpush3.bf16.msra.mxu1 %v3739_v34 }
 0x13b   :  { %3403 = vmatmul.mubr.msk.bf16.vlgmr.msra.gmra.mrb[0].mxu1 %vm318_vm4, %v637_v41 }
 0x20e   :  { %v3404_v47 = vpop.f32.mrb[0].mxu1 }
 0x20f   :  { %v723_v48 = vadd.f32 %v3404_v47, %v3120_v46  ;;  %v695_v49 = vpop.f32.mrb[1].mxu1 }
 0x210   :  { %v721_v50 = vadd.f32 %v3120_v46, %v695_v49  ;;  %v3405_v51 = vpop.f32.mrb[2].mxu1 }
 0x211   :  { %v727_v52 = vmul.f32 0.1, %v723_v48  ;;  %v724_v53 = vadd.f32 %v3405_v51, %v3120_v46  ;;  %v698_v54 = vpop.f32.mrb[3].mxu1 }
 0x212   :  { %v725_v55 = vmul.f32 0.1, %v721_v50  ;;  %v722_v56 = vadd.f32 %v3120_v46, %v698_v54 }
 0x213   :  { %v4071_v57 = vmax.f32 %v723_v48, %v727_v52  ;;  %v728_v58 = vmul.f32 0.1, %v724_v53 }
 0x214   :  { %v729_v59 = vmax.f32 %v721_v50, %v725_v55  ;;  %v726_v61 = vmul.f32 0.1, %v722_v56 }
 0x215   :  { %v742_v63 = vrot.slane %v4071_v57, 6  ;;  %v894_v0 = vrot.slane %v4071_v57, 7  ;;  %v732_v1 = vmax.f32 %v724_v53, %v728_v58  ;;  %v984_v2 = vrot.slane %v4071_v57, 1 }
 0x216   :  { %v730_v3 = vmax.f32 %v722_v56, %v726_v61  ;;  %v740_v4 = vrot.slane %v729_v59, 6  ;;  %v892_v5 = vrot.slane %v729_v59, 7  ;;  %v982_v6 = vrot.slane %v729_v59, 1  ;;  %v3744_v61 = vld [vmem:[#allocation5 + $0x10] sm:$0xff]  }
 0x217   :  { %v985_v8 = vrot.slane %v732_v1, 1  ;;  %v1075_v9 = vrot.slane %v732_v1, 2  ;;  %v743_v10 = vrot.slane %v732_v1, 6  ;;  %v734_v11 = vpack.c.bf16 %v732_v1, %v4071_v57 }
 0x218   :  { %v741_v12 = vrot.slane %v730_v3, 6  ;;  %v733_v13 = vpack.c.bf16 %v730_v3, %v729_v59  ;;  %v893_v14 = vrot.slane %v730_v3, 7  ;;  %v895_v15 = vrot.slane %v732_v1, 7 }
 0x219   :  { %v747_v20 = vsel %vm291_vm3, %v743_v10, %v740_v4  ;;  %v744_v25 = vsel %vm291_vm3, %v742_v63, %v743_v10  ;;  %v983_v26 = vrot.slane %v730_v3, 1  ;;  %v986_v28 = vsel %vm536_vm8, %v984_v2, %v985_v8  ;;  %v3751_v10 = vld [vmem:[#allocation2 + $0x58] sm:$0xff]  }
 0x21a   :  { %v746_v29 = vsel %vm291_vm3, %v740_v4, %v741_v12  ;;  %v748_v30 = vmul.f32 %v747_v20, %v3971_v24  ;;  %v745_v31 = vsel %vm291_vm3, %v741_v12, %v742_v63  ;;  %v898_v32 = vsel %vm445_vm6, %v892_v5, %v893_v14  ;;  %v3746_v4 = vld [vmem:[#allocation5 + $0x30] sm:$0xff]   ;;  %v3141_v12 = vld [vmem:[%s4464_s6] ss:$0 sm:$0xff] }
 0x21b   :  { %v750_v33 = vmul.f32 %v745_v31, %v3976_v27  ;;  %v899_v34 = vsel %vm445_vm6, %v895_v15, %v892_v5  ;;  %v896_v35 = vsel %vm445_vm6, %v894_v0, %v895_v15  ;;  %v897_v36 = vsel %vm445_vm6, %v893_v14, %v894_v0  ;;  %v3747_v5 = vld [vmem:[#allocation5 + $0x38] sm:$0xff]  }
 0x21c   :  { %v752_v38 = vpack.c.bf16 %v746_v29, %v748_v30  ;;  %v900_v39 = vmul.f32 %v899_v34, %v3999_v44  ;;  %v902_v40 = vmul.f32 %v897_v36, %v4017_v60  ;;  %v987_v41 = vsel %vm536_vm8, %v983_v26, %v984_v2 }
 0x21d   :  { %v753_v42 = vpack.c.bf16 %v744_v25, %v750_v33  ;;  %v988_v46 = vsel %vm536_vm8, %v982_v6, %v983_v26  ;;  %v991_v47 = vmul.f32 %v987_v41, %v4022_v62  ;;  %v989_v48 = vsel %vm536_vm8, %v985_v8, %v982_v6  ;;  %v3748_v6 = vld [vmem:[#allocation5 + $0x40] sm:$0xff]   ;;  %v3749_v8 = vld [vmem:[#allocation5 + $0x48] sm:$0xff]  }
 0x21e   :  { %3410 = vmatprep.mubr.msk.bf16.mxu0 %vm318_vm4, %v752_v38  ;;  %v904_v49 = vpack.c.bf16 %v898_v32, %v900_v39  ;;  %v905_v50 = vpack.c.bf16 %v896_v35, %v902_v40  ;;  %v993_v51 = vmul.f32 %v989_v48, %v4040_v18  ;;  %v1072_v52 = vrot.slane %v729_v59, 2 }
 0x21f   :  { %3411 = vmatmul.mubr.msk.bf16.vlgmr.msra.gmra.mrb[4].mxu0 %vm318_vm4, %v753_v42  ;;  %v994_v53 = vpack.c.bf16 %v991_v47, %v988_v46  ;;  %v1073_v54 = vrot.slane %v730_v3, 2  ;;  %v1074_v55 = vrot.slane %v4071_v57, 2  ;;  %v3745_v3 = vld [vmem:[#allocation5 + $0x18] sm:$0xff]  }
 0x220   :  { %3415 = vmatpush3.bf16.msra.mxu0 %v3742_v45  ;;  %3418 = vmatprep.mubr.msk.bf16.mxu0 %vm318_vm4, %v733_v13  ;;  %v995_v56 = vpack.c.bf16 %v993_v51, %v986_v28  ;;  %v1079_v58 = vsel %vm627_vm11, %v1075_v9, %v1072_v52 }
 0x221   :  { %3416 = vmatprep.subr.bf16.mxu0 %v3743_v43  ;;  %v1077_v63 = vsel %vm627_vm11, %v1073_v54, %v1074_v55  ;;  %v1078_v59 = vsel %vm627_vm11, %v1072_v52, %v1073_v54  ;;  %v1076_v0 = vsel %vm627_vm11, %v1074_v55, %v1075_v9  ;;  %v1083_v57 = vmul.f32 %v1079_v58, %v4060_v37  ;;  %v3750_v9 = vld [vmem:[#allocation2 + $0x50] sm:$0xff]   ;;  %v3755_v55 = vld [vmem:[#allocation2 + $0x68] sm:$0xff]  }
 0x222   :  { %v1081_v45 = vmul.f32 %v1077_v63, %v4045_v22  ;;  %3446 = vmatprep.subr.bf16.mxu1 %v3750_v9  ;;  %v3756_v63 = vld [vmem:[#allocation2 + $0x80] sm:$0xff]  }
 0x223   :  { %v1085_v1 = vpack.c.bf16 %v1083_v57, %v1076_v0  ;;  %3447 = vmatpush3.bf16.msra.mxu1 %v3750_v9 }
 0x224   :  { %3417 = vmatpush3.bf16.msra.mxu0 %v3743_v43  ;;  %v1084_v2 = vpack.c.bf16 %v1081_v45, %v1078_v59  ;;  %3448 = vmatprep.subr.bf16.mxu1 %v3751_v10  ;;  %v3753_v43 = vld [vmem:[#allocation2 + $0x78] sm:$0xff]  }
 0x225   :  { %3422 = vmatprep.subr.bf16.mxu0 %v3744_v61 }
 0x227   :  { %3449 = vmatpush3.bf16.msra.mxu1 %v3751_v10 }
 0x22b   :  { %3419 = vmatmul.mubr.msk.bf16.vlgmr.msra.gmra.mrb[4].mxu0 %vm318_vm4, %v734_v11  ;;  %v3752_v11 = vld [vmem:[#allocation2 + $0x70] sm:$0xff]  }
 0x22c   :  { %3423 = vmatpush3.bf16.msra.mxu0 %v3744_v61  ;;  %3426 = vmatprep.mubr.msk.bf16.mxu0 %vm318_vm4, %v904_v49  ;;  %v3754_v49 = vld [vmem:[#allocation2 + $0x60] sm:$0xff]  }
 0x22d   :  { %3424 = vmatprep.subr.bf16.mxu0 %v3745_v3  ;;  %3454 = vmatprep.subr.bf16.mxu1 %v3752_v11 }
 0x230   :  { %3425 = vmatpush3.bf16.msra.mxu0 %v3745_v3 }
 0x231   :  { %3430 = vmatprep.subr.bf16.mxu0 %v3746_v4 }
 0x237   :  { %3427 = vmatmul.mubr.msk.bf16.vlgmr.msra.gmra.mrb[4].mxu0 %vm318_vm4, %v905_v50 }
 0x238   :  { %3431 = vmatpush3.bf16.msra.mxu0 %v3746_v4  ;;  %3434 = vmatprep.mubr.msk.bf16.mxu0 %vm318_vm4, %v994_v53 }
 0x239   :  { %3432 = vmatprep.subr.bf16.mxu0 %v3747_v5 }
 0x23c   :  { %3433 = vmatpush3.bf16.msra.mxu0 %v3747_v5 }
 0x23d   :  { %3438 = vmatprep.subr.bf16.mxu0 %v3748_v6 }
 0x243   :  { %3435 = vmatmul.mubr.msk.bf16.vlgmr.msra.gmra.mrb[4].mxu0 %vm318_vm4, %v995_v56 }
 0x244   :  { %3439 = vmatpush3.bf16.msra.mxu0 %v3748_v6  ;;  %3442 = vmatprep.mubr.msk.bf16.mxu0 %vm318_vm4, %v1084_v2  ;;  %v3757_v6 = vld [vmem:[#allocation2 + $0x88] sm:$0xff]  }
 0x245   :  { %3440 = vmatprep.subr.bf16.mxu0 %v3749_v8 }
 0x248   :  { %3441 = vmatpush3.bf16.msra.mxu0 %v3749_v8 }
 0x24f   :  { %3443 = vmatmul.mubr.msk.bf16.vlgmr.msra.gmra.mrb[4].mxu0 %vm318_vm4, %v1085_v1 }
 0x322   :  { %v3444_v13 = vpop.f32.mrb[4].mxu0 }
 0x323   :  { %v1171_v14 = vadd.f32 %v3444_v13, %v3141_v12  ;;  %v1143_v15 = vpop.f32.mrb[5].mxu0 }
 0x324   :  { %v1169_v20 = vadd.f32 %v3141_v12, %v1143_v15  ;;  %v3445_v25 = vpop.f32.mrb[6].mxu0 }
 0x325   :  { %v1172_v26 = vadd.f32 %v3445_v25, %v3141_v12  ;;  %v1146_v28 = vpop.f32.mrb[7].mxu0  ;;  %v4132_v29 = vadd.f32 %v1171_v14, %v3960_v16 }
 0x326   :  { %v4135_v30 = vadd.f32 %v1169_v20, %v3962_v17  ;;  %v1170_v31 = vadd.f32 %v3141_v12, %v1146_v28 }
 0x327   :  { %v4138_v32 = vadd.f32 %v1172_v26, %v3964_v19  ;;  %v1186_v38 = vrot.slane %v4132_v29, 6  ;;  %v1339_v61 = vrot.slane %v4132_v29, 7  ;;  %v1429_v59 = vrot.slane %v4132_v29, 1 }
 0x328   :  { %v4141_v33 = vadd.f32 %v1170_v31, %v3966_v21  ;;  %v1184_v34 = vrot.slane %v4135_v30, 6  ;;  %v1337_v47 = vrot.slane %v4135_v30, 7  ;;  %v1427_v2 = vrot.slane %v4135_v30, 1 }
 0x329   :  { %v1187_v35 = vrot.slane %v4138_v32, 6  ;;  %v1340_v48 = vrot.slane %v4138_v32, 7  ;;  %v1178_v54 = vpack.c.bf16 %v4138_v32, %v4132_v29  ;;  %v1430_v9 = vrot.slane %v4138_v32, 1 }
 0x32a   :  { %v1185_v36 = vrot.slane %v4141_v33, 6  ;;  %v1177_v46 = vpack.c.bf16 %v4141_v33, %v4135_v30  ;;  %v1338_v50 = vrot.slane %v4141_v33, 7  ;;  %v1428_v58 = vrot.slane %v4141_v33, 1 }
 0x32b   :  { %v1191_v16 = vsel %vm291_vm3, %v1187_v35, %v1184_v34  ;;  %v1188_v41 = vsel %vm291_vm3, %v1186_v38, %v1187_v35  ;;  %v1344_v51 = vsel %vm445_vm6, %v1340_v48, %v1337_v47  ;;  %v1341_v3 = vsel %vm445_vm6, %v1339_v61, %v1340_v48 }
 0x32c   :  { %v1190_v17 = vsel %vm291_vm3, %v1184_v34, %v1185_v36  ;;  %v1192_v19 = vmul.f32 %v1191_v16, %v3971_v24  ;;  %v1189_v21 = vsel %vm291_vm3, %v1185_v36, %v1186_v38  ;;  %v1345_v52 = vmul.f32 %v1344_v51, %v3999_v44  ;;  %v3759_v34 = vld [vmem:[#allocation2 + $0x98] sm:$0xff]  }
 0x32d   :  { %v1194_v39 = vmul.f32 %v1189_v21, %v3976_v27  ;;  %v1343_v53 = vsel %vm445_vm6, %v1337_v47, %v1338_v50  ;;  %v1342_v0 = vsel %vm445_vm6, %v1338_v50, %v1339_v61  ;;  %v1432_v57 = vsel %vm536_vm8, %v1428_v58, %v1429_v59  ;;  %v3760_v21 = vld [vmem:[#allocation5 + $0x50] sm:$0xff]  }
 0x32e   :  { %v1196_v40 = vpack.c.bf16 %v1190_v17, %v1192_v19  ;;  %v1349_v56 = vpack.c.bf16 %v1343_v53, %v1345_v52  ;;  %v1347_v45 = vmul.f32 %v1342_v0, %v4017_v60  ;;  %v1436_v1 = vmul.f32 %v1432_v57, %v4022_v62  ;;  %3486 = vmatprep.subr.bf16.mxu0 %v3760_v21 }
 0x32f   :  { %v1197_v42 = vpack.c.bf16 %v1188_v41, %v1194_v39  ;;  %v1433_v5 = vsel %vm536_vm8, %v1427_v2, %v1428_v58  ;;  %v1518_v10 = vrot.slane %v4141_v33, 2  ;;  %v1519_v12 = vrot.slane %v4132_v29, 2  ;;  %v3761_v39 = vld [vmem:[#allocation5 + $0x58] sm:$0xff]   ;;  %3487 = vmatpush3.bf16.msra.mxu0 %v3760_v21 }
 0x330   :  { %3450 = vmatprep.mubr.msk.bf16.mxu1 %vm318_vm4, %v1196_v40  ;;  %v1350_v4 = vpack.c.bf16 %v1341_v3, %v1347_v45  ;;  %v1439_v8 = vpack.c.bf16 %v1436_v1, %v1433_v5  ;;  %v1434_v13 = vsel %vm536_vm8, %v1430_v9, %v1427_v2  ;;  %v1517_v25 = vrot.slane %v4135_v30, 2  ;;  %3488 = vmatprep.subr.bf16.mxu0 %v3761_v39  ;;  %v3762_v40 = vld [vmem:[#allocation5 + $0x70] sm:$0xff]   ;;  %v3163_v41 = vld [vmem:[%s4462_s4 + $0x1] ss:$0 sm:$0xff] }
 0x331   :  { %3451 = vmatmul.mubr.msk.bf16.vlgmr.msra.gmra.mrb[4].mxu1 %vm318_vm4, %v1197_v42  ;;  %v1522_v14 = vsel %vm627_vm11, %v1518_v10, %v1519_v12  ;;  %v1438_v15 = vmul.f32 %v1434_v13, %v4040_v18  ;;  %v1431_v26 = vsel %vm536_vm8, %v1429_v59, %v1430_v9  ;;  %v1520_v36 = vrot.slane %v4138_v32, 2 }
 0x332   :  { %3455 = vmatpush3.bf16.msra.mxu1 %v3752_v11  ;;  %3458 = vmatprep.mubr.msk.bf16.mxu1 %vm318_vm4, %v1177_v46  ;;  %v3758_v11 = vld [vmem:[#allocation2 + $0x90] sm:$0xff]   ;;  %v1526_v20 = vmul.f32 %v1522_v14, %v4045_v22  ;;  %v1523_v31 = vsel %vm627_vm11, %v1517_v25, %v1518_v10 }
 0x333   :  { %3456 = vmatprep.subr.bf16.mxu1 %v3753_v43  ;;  %v1440_v28 = vpack.c.bf16 %v1438_v15, %v1431_v26  ;;  %v1524_v38 = vsel %vm627_vm11, %v1520_v36, %v1517_v25  ;;  %v1521_v17 = vsel %vm627_vm11, %v1519_v12, %v1520_v36  ;;  %3489 = vmatpush3.bf16.msra.mxu0 %v3761_v39  ;;  %v3763_v39 = vld [vmem:[#allocation5 + $0x78] sm:$0xff]  }
 0x334   :  { %v1529_v35 = vpack.c.bf16 %v1526_v20, %v1523_v31  ;;  %v1528_v16 = vmul.f32 %v1524_v38, %v4060_v37  ;;  %3494 = vmatprep.subr.bf16.mxu0 %v3762_v40 }
 0x336   :  { %3457 = vmatpush3.bf16.msra.mxu1 %v3753_v43  ;;  %v1530_v19 = vpack.c.bf16 %v1528_v16, %v1521_v17 }
 0x337   :  { %3462 = vmatprep.subr.bf16.mxu1 %v3754_v49 }
 0x33d   :  { %3459 = vmatmul.mubr.msk.bf16.vlgmr.msra.gmra.mrb[4].mxu1 %vm318_vm4, %v1178_v54 }
 0x33e   :  { %3463 = vmatpush3.bf16.msra.mxu1 %v3754_v49  ;;  %3466 = vmatprep.mubr.msk.bf16.mxu1 %vm318_vm4, %v1349_v56 }
 0x33f   :  { %3464 = vmatprep.subr.bf16.mxu1 %v3755_v55 }
 0x342   :  { %3465 = vmatpush3.bf16.msra.mxu1 %v3755_v55 }
 0x343   :  { %3470 = vmatprep.subr.bf16.mxu1 %v3756_v63 }
 0x349   :  { %3467 = vmatmul.mubr.msk.bf16.vlgmr.msra.gmra.mrb[4].mxu1 %vm318_vm4, %v1350_v4 }
 0x34a   :  { %3471 = vmatpush3.bf16.msra.mxu1 %v3756_v63  ;;  %3474 = vmatprep.mubr.msk.bf16.mxu1 %vm318_vm4, %v1439_v8 }
 0x34b   :  { %3472 = vmatprep.subr.bf16.mxu1 %v3757_v6 }
 0x34e   :  { %3473 = vmatpush3.bf16.msra.mxu1 %v3757_v6 }
 0x34f   :  { %3478 = vmatprep.subr.bf16.mxu1 %v3758_v11 }
 0x355   :  { %3475 = vmatmul.mubr.msk.bf16.vlgmr.msra.gmra.mrb[4].mxu1 %vm318_vm4, %v1440_v28 }
 0x356   :  { %3479 = vmatpush3.bf16.msra.mxu1 %v3758_v11  ;;  %3482 = vmatprep.mubr.msk.bf16.mxu1 %vm318_vm4, %v1529_v35 }
 0x357   :  { %3480 = vmatprep.subr.bf16.mxu1 %v3759_v34 }
 0x35a   :  { %3481 = vmatpush3.bf16.msra.mxu1 %v3759_v34 }
 0x361   :  { %3483 = vmatmul.mubr.msk.bf16.vlgmr.msra.gmra.mrb[4].mxu1 %vm318_vm4, %v1530_v19 }
 0x434   :  { %v3484_v42 = vpop.f32.mrb[4].mxu1 }
 0x435   :  { %v1617_v43 = vadd.f32 %v3484_v42, %v3163_v41  ;;  %v1588_v46 = vpop.f32.mrb[5].mxu1 }
 0x436   :  { %v1615_v47 = vadd.f32 %v3163_v41, %v1588_v46  ;;  %v3485_v48 = vpop.f32.mrb[6].mxu1 }
 0x437   :  { %v1621_v49 = vmul.f32 0.1, %v1617_v43  ;;  %v1618_v50 = vadd.f32 %v3485_v48, %v3163_v41  ;;  %v1591_v51 = vpop.f32.mrb[7].mxu1 }
 0x438   :  { %v1619_v52 = vmul.f32 0.1, %v1615_v47  ;;  %v1616_v53 = vadd.f32 %v3163_v41, %v1591_v51 }
 0x439   :  { %v4216_v54 = vmax.f32 %v1617_v43, %v1621_v49  ;;  %v1622_v55 = vmul.f32 0.1, %v1618_v50 }
 0x43a   :  { %v1623_v56 = vmax.f32 %v1615_v47, %v1619_v52  ;;  %v1620_v58 = vmul.f32 0.1, %v1616_v53 }
 0x43b   :  { %v1636_v61 = vrot.slane %v4216_v54, 6  ;;  %v1789_v63 = vrot.slane %v4216_v54, 7  ;;  %v1626_v59 = vmax.f32 %v1618_v50, %v1622_v55  ;;  %v1879_v0 = vrot.slane %v4216_v54, 1 }
 0x43c   :  { %v1624_v57 = vmax.f32 %v1616_v53, %v1620_v58  ;;  %v1634_v45 = vrot.slane %v1623_v56, 6  ;;  %v1787_v1 = vrot.slane %v1623_v56, 7  ;;  %v1877_v2 = vrot.slane %v1623_v56, 1  ;;  %v3764_v58 = vld [vmem:[#allocation5 + $0x60] sm:$0xff]  }
 0x43d   :  { %v1880_v3 = vrot.slane %v1626_v59, 1  ;;  %v1970_v4 = vrot.slane %v1626_v59, 2  ;;  %v1637_v5 = vrot.slane %v1626_v59, 6  ;;  %v1628_v6 = vpack.c.bf16 %v1626_v59, %v4216_v54 }
 0x43e   :  { %v1635_v8 = vrot.slane %v1624_v57, 6  ;;  %v1627_v9 = vpack.c.bf16 %v1624_v57, %v1623_v56  ;;  %v1788_v10 = vrot.slane %v1624_v57, 7  ;;  %v1790_v11 = vrot.slane %v1626_v59, 7 }
 0x43f   :  { %v1641_v12 = vsel %vm291_vm3, %v1637_v5, %v1634_v45  ;;  %v1638_v13 = vsel %vm291_vm3, %v1636_v61, %v1637_v5  ;;  %v1878_v14 = vrot.slane %v1624_v57, 1  ;;  %v1881_v15 = vsel %vm536_vm8, %v1879_v0, %v1880_v3  ;;  %v3771_v5 = vld [vmem:[#allocation2 + $0xa8] sm:$0xff]  }
 0x440   :  { %v1640_v20 = vsel %vm291_vm3, %v1634_v45, %v1635_v8  ;;  %v1642_v25 = vmul.f32 %v1641_v12, %v3971_v24  ;;  %v1639_v26 = vsel %vm291_vm3, %v1635_v8, %v1636_v61  ;;  %v1793_v28 = vsel %vm445_vm6, %v1787_v1, %v1788_v10  ;;  %v3766_v45 = vld [vmem:[#allocation5 + $0x80] sm:$0xff]   ;;  %v3185_v8 = vld [vmem:[%s4464_s6 + $0x1] ss:$0 sm:$0xff] }
 0x441   :  { %v1644_v31 = vmul.f32 %v1639_v26, %v3976_v27  ;;  %v1794_v34 = vsel %vm445_vm6, %v1790_v11, %v1787_v1  ;;  %v1791_v35 = vsel %vm445_vm6, %v1789_v63, %v1790_v11  ;;  %v1792_v36 = vsel %vm445_vm6, %v1788_v10, %v1789_v63  ;;  %v3767_v1 = vld [vmem:[#allocation5 + $0x88] sm:$0xff]  }
 0x442   :  { %v1646_v38 = vpack.c.bf16 %v1640_v20, %v1642_v25  ;;  %v1795_v16 = vmul.f32 %v1794_v34, %v3999_v44  ;;  %v1797_v17 = vmul.f32 %v1792_v36, %v4017_v60  ;;  %v1882_v19 = vsel %vm536_vm8, %v1878_v14, %v1879_v0 }
 0x443   :  { %v1647_v21 = vpack.c.bf16 %v1638_v13, %v1644_v31  ;;  %v1883_v41 = vsel %vm536_vm8, %v1877_v2, %v1878_v14  ;;  %v1886_v42 = vmul.f32 %v1882_v19, %v4022_v62  ;;  %v1884_v43 = vsel %vm536_vm8, %v1880_v3, %v1877_v2  ;;  %v3768_v2 = vld [vmem:[#allocation5 + $0x90] sm:$0xff]   ;;  %v3769_v3 = vld [vmem:[#allocation5 + $0x98] sm:$0xff]  }
 0x444   :  { %3490 = vmatprep.mubr.msk.bf16.mxu0 %vm318_vm4, %v1646_v38  ;;  %v1799_v46 = vpack.c.bf16 %v1793_v28, %v1795_v16  ;;  %v1800_v47 = vpack.c.bf16 %v1791_v35, %v1797_v17  ;;  %v1888_v48 = vmul.f32 %v1884_v43, %v4040_v18  ;;  %v1967_v49 = vrot.slane %v1623_v56, 2 }
 0x445   :  { %3491 = vmatmul.mubr.msk.bf16.vlgmr.msra.gmra.mrb[8].mxu0 %vm318_vm4, %v1647_v21  ;;  %v1889_v50 = vpack.c.bf16 %v1886_v42, %v1883_v41  ;;  %v1968_v51 = vrot.slane %v1624_v57, 2  ;;  %v1969_v52 = vrot.slane %v4216_v54, 2  ;;  %v3765_v57 = vld [vmem:[#allocation5 + $0x68] sm:$0xff]  }
 0x446   :  { %3495 = vmatpush3.bf16.msra.mxu0 %v3762_v40  ;;  %3498 = vmatprep.mubr.msk.bf16.mxu0 %vm318_vm4, %v1627_v9  ;;  %v1890_v53 = vpack.c.bf16 %v1888_v48, %v1881_v15  ;;  %v1974_v55 = vsel %vm627_vm11, %v1970_v4, %v1967_v49 }
 0x447   :  { %3496 = vmatprep.subr.bf16.mxu0 %v3763_v39  ;;  %v1972_v61 = vsel %vm627_vm11, %v1968_v51, %v1969_v52  ;;  %v1973_v56 = vsel %vm627_vm11, %v1967_v49, %v1968_v51  ;;  %v1971_v63 = vsel %vm627_vm11, %v1969_v52, %v1970_v4  ;;  %v1978_v54 = vmul.f32 %v1974_v55, %v4060_v37  ;;  %v3770_v4 = vld [vmem:[#allocation2 + $0xa0] sm:$0xff]   ;;  %v3775_v52 = vld [vmem:[#allocation2 + $0xb8] sm:$0xff]  }
 0x448   :  { %v1976_v40 = vmul.f32 %v1972_v61, %v4045_v22  ;;  %3526 = vmatprep.subr.bf16.mxu1 %v3770_v4  ;;  %v3776_v61 = vld [vmem:[#allocation2 + $0xd0] sm:$0xff]  }
 0x449   :  { %v1980_v59 = vpack.c.bf16 %v1978_v54, %v1971_v63  ;;  %3527 = vmatpush3.bf16.msra.mxu1 %v3770_v4 }
 0x44a   :  { %3497 = vmatpush3.bf16.msra.mxu0 %v3763_v39  ;;  %v1979_v0 = vpack.c.bf16 %v1976_v40, %v1973_v56  ;;  %3528 = vmatprep.subr.bf16.mxu1 %v3771_v5  ;;  %v3773_v39 = vld [vmem:[#allocation2 + $0xc8] sm:$0xff]  }
 0x44b   :  { %3502 = vmatprep.subr.bf16.mxu0 %v3764_v58 }
 0x44d   :  { %3529 = vmatpush3.bf16.msra.mxu1 %v3771_v5 }
 0x451   :  { %3499 = vmatmul.mubr.msk.bf16.vlgmr.msra.gmra.mrb[8].mxu0 %vm318_vm4, %v1628_v6  ;;  %v3772_v6 = vld [vmem:[#allocation2 + $0xc0] sm:$0xff]  }
 0x452   :  { %3503 = vmatpush3.bf16.msra.mxu0 %v3764_v58  ;;  %3506 = vmatprep.mubr.msk.bf16.mxu0 %vm318_vm4, %v1799_v46  ;;  %v3774_v46 = vld [vmem:[#allocation2 + $0xb0] sm:$0xff]  }
 0x453   :  { %3504 = vmatprep.subr.bf16.mxu0 %v3765_v57  ;;  %3534 = vmatprep.subr.bf16.mxu1 %v3772_v6 }
 0x456   :  { %3505 = vmatpush3.bf16.msra.mxu0 %v3765_v57 }
 0x457   :  { %3510 = vmatprep.subr.bf16.mxu0 %v3766_v45 }
 0x45d   :  { %3507 = vmatmul.mubr.msk.bf16.vlgmr.msra.gmra.mrb[8].mxu0 %vm318_vm4, %v1800_v47 }
 0x45e   :  { %3511 = vmatpush3.bf16.msra.mxu0 %v3766_v45  ;;  %3514 = vmatprep.mubr.msk.bf16.mxu0 %vm318_vm4, %v1889_v50 }
 0x45f   :  { %3512 = vmatprep.subr.bf16.mxu0 %v3767_v1 }
 0x462   :  { %3513 = vmatpush3.bf16.msra.mxu0 %v3767_v1 }
 0x463   :  { %3518 = vmatprep.subr.bf16.mxu0 %v3768_v2 }
 0x469   :  { %3515 = vmatmul.mubr.msk.bf16.vlgmr.msra.gmra.mrb[8].mxu0 %vm318_vm4, %v1890_v53 }
 0x46a   :  { %3519 = vmatpush3.bf16.msra.mxu0 %v3768_v2  ;;  %3522 = vmatprep.mubr.msk.bf16.mxu0 %vm318_vm4, %v1979_v0  ;;  %v3777_v2 = vld [vmem:[#allocation2 + $0xd8] sm:$0xff]  }
 0x46b   :  { %3520 = vmatprep.subr.bf16.mxu0 %v3769_v3 }
 0x46e   :  { %3521 = vmatpush3.bf16.msra.mxu0 %v3769_v3 }
 0x475   :  { %3523 = vmatmul.mubr.msk.bf16.vlgmr.msra.gmra.mrb[8].mxu0 %vm318_vm4, %v1980_v59 }
 0x548   :  { %v3524_v9 = vpop.f32.mrb[8].mxu0 }
 0x549   :  { %v2067_v10 = vadd.f32 %v3524_v9, %v3185_v8  ;;  %v2038_v11 = vpop.f32.mrb[9].mxu0 }
 0x54a   :  { %v2065_v12 = vadd.f32 %v3185_v8, %v2038_v11  ;;  %v3525_v13 = vpop.f32.mrb[10].mxu0 }
 0x54b   :  { %v2068_v14 = vadd.f32 %v3525_v13, %v3185_v8  ;;  %v2041_v15 = vpop.f32.mrb[11].mxu0  ;;  %v4277_v20 = vadd.f32 %v2067_v10, %v4132_v29 }
 0x54c   :  { %v4280_v25 = vadd.f32 %v2065_v12, %v4135_v30  ;;  %v2066_v26 = vadd.f32 %v3185_v8, %v2041_v15 }
 0x54d   :  { %v4283_v28 = vadd.f32 %v2068_v14, %v4138_v32  ;;  %v2082_v38 = vrot.slane %v4277_v20, 6  ;;  %v2235_v58 = vrot.slane %v4277_v20, 7  ;;  %v2325_v56 = vrot.slane %v4277_v20, 1 }
 0x54e   :  { %v4286_v31 = vadd.f32 %v2066_v26, %v4141_v33  ;;  %v2080_v34 = vrot.slane %v4280_v25, 6  ;;  %v2233_v42 = vrot.slane %v4280_v25, 7  ;;  %v2323_v0 = vrot.slane %v4280_v25, 1 }
 0x54f   :  { %v2083_v35 = vrot.slane %v4283_v28, 6  ;;  %v2236_v43 = vrot.slane %v4283_v28, 7  ;;  %v2074_v51 = vpack.c.bf16 %v4283_v28, %v4277_v20  ;;  %v2326_v4 = vrot.slane %v4283_v28, 1 }
 0x550   :  { %v2081_v36 = vrot.slane %v4286_v31, 6  ;;  %v2073_v41 = vpack.c.bf16 %v4286_v31, %v4280_v25  ;;  %v2234_v47 = vrot.slane %v4286_v31, 7  ;;  %v2324_v55 = vrot.slane %v4286_v31, 1 }
 0x551   :  { %v2087_v29 = vsel %vm291_vm3, %v2083_v35, %v2080_v34  ;;  %v2084_v19 = vsel %vm291_vm3, %v2082_v38, %v2083_v35  ;;  %v2240_v48 = vsel %vm445_vm6, %v2236_v43, %v2233_v42  ;;  %v2237_v57 = vsel %vm445_vm6, %v2235_v58, %v2236_v43 }
 0x552   :  { %v2086_v30 = vsel %vm291_vm3, %v2080_v34, %v2081_v36  ;;  %v2088_v32 = vmul.f32 %v2087_v29, %v3971_v24  ;;  %v2085_v33 = vsel %vm291_vm3, %v2081_v36, %v2082_v38  ;;  %v2241_v49 = vmul.f32 %v2240_v48, %v3999_v44  ;;  %v3779_v34 = vld [vmem:[#allocation2 + $0xe8] sm:$0xff]  }
 0x553   :  { %v2090_v16 = vmul.f32 %v2085_v33, %v3976_v27  ;;  %v2239_v50 = vsel %vm445_vm6, %v2233_v42, %v2234_v47  ;;  %v2238_v63 = vsel %vm445_vm6, %v2234_v47, %v2235_v58  ;;  %v2328_v54 = vsel %vm536_vm8, %v2324_v55, %v2325_v56  ;;  %v3780_v33 = vld [vmem:[#allocation5 + $0xa0] sm:$0xff]  }
 0x554   :  { %v2092_v17 = vpack.c.bf16 %v2086_v30, %v2088_v32  ;;  %v2245_v53 = vpack.c.bf16 %v2239_v50, %v2241_v49  ;;  %v2243_v40 = vmul.f32 %v2238_v63, %v4017_v60  ;;  %v2332_v59 = vmul.f32 %v2328_v54, %v4022_v62  ;;  %3566 = vmatprep.subr.bf16.mxu0 %v3780_v33 }
 0x555   :  { %v2093_v21 = vpack.c.bf16 %v2084_v19, %v2090_v16  ;;  %v2329_v1 = vsel %vm536_vm8, %v2323_v0, %v2324_v55  ;;  %v2414_v5 = vrot.slane %v4286_v31, 2  ;;  %v2415_v8 = vrot.slane %v4277_v20, 2  ;;  %v3781_v16 = vld [vmem:[#allocation5 + $0xa8] sm:$0xff]   ;;  %3567 = vmatpush3.bf16.msra.mxu0 %v3780_v33  ;;  %v3207_v19 = vld [vmem:[%s4462_s4 + $0x2] ss:$0 sm:$0xff] }
 0x556   :  { %3530 = vmatprep.mubr.msk.bf16.mxu1 %vm318_vm4, %v2092_v17  ;;  %v2246_v45 = vpack.c.bf16 %v2237_v57, %v2243_v40  ;;  %v2335_v3 = vpack.c.bf16 %v2332_v59, %v2329_v1  ;;  %v2330_v9 = vsel %vm536_vm8, %v2326_v4, %v2323_v0  ;;  %v2413_v13 = vrot.slane %v4280_v25, 2  ;;  %3568 = vmatprep.subr.bf16.mxu0 %v3781_v16  ;;  %v3782_v17 = vld [vmem:[#allocation5 + $0xc0] sm:$0xff]   ;;  %v3783_v33 = vld [vmem:[#allocation5 + $0xc8] sm:$0xff]  }
 0x557   :  { %3531 = vmatmul.mubr.msk.bf16.vlgmr.msra.gmra.mrb[8].mxu1 %vm318_vm4, %v2093_v21  ;;  %v2418_v10 = vsel %vm627_vm11, %v2414_v5, %v2415_v8  ;;  %v2334_v11 = vmul.f32 %v2330_v9, %v4040_v18  ;;  %v2327_v14 = vsel %vm536_vm8, %v2325_v56, %v2326_v4  ;;  %v2416_v36 = vrot.slane %v4283_v28, 2 }
 0x558   :  { %3535 = vmatpush3.bf16.msra.mxu1 %v3772_v6  ;;  %3538 = vmatprep.mubr.msk.bf16.mxu1 %vm318_vm4, %v2073_v41  ;;  %v3778_v6 = vld [vmem:[#allocation2 + $0xe0] sm:$0xff]   ;;  %v2422_v12 = vmul.f32 %v2418_v10, %v4045_v22  ;;  %v2419_v26 = vsel %vm627_vm11, %v2413_v13, %v2414_v5 }
 0x559   :  { %3536 = vmatprep.subr.bf16.mxu1 %v3773_v39  ;;  %v2336_v15 = vpack.c.bf16 %v2334_v11, %v2327_v14  ;;  %v2420_v38 = vsel %vm627_vm11, %v2416_v36, %v2413_v13  ;;  %v2417_v30 = vsel %vm627_vm11, %v2415_v8, %v2416_v36  ;;  %3569 = vmatpush3.bf16.msra.mxu0 %v3781_v16 }
 0x55a   :  { %v2425_v35 = vpack.c.bf16 %v2422_v12, %v2419_v26  ;;  %v2424_v29 = vmul.f32 %v2420_v38, %v4060_v37  ;;  %3574 = vmatprep.subr.bf16.mxu0 %v3782_v17 }
 0x55c   :  { %3537 = vmatpush3.bf16.msra.mxu1 %v3773_v39  ;;  %v2426_v32 = vpack.c.bf16 %v2424_v29, %v2417_v30 }
 0x55d   :  { %3542 = vmatprep.subr.bf16.mxu1 %v3774_v46 }
 0x563   :  { %3539 = vmatmul.mubr.msk.bf16.vlgmr.msra.gmra.mrb[8].mxu1 %vm318_vm4, %v2074_v51 }
 0x564   :  { %3543 = vmatpush3.bf16.msra.mxu1 %v3774_v46  ;;  %3546 = vmatprep.mubr.msk.bf16.mxu1 %vm318_vm4, %v2245_v53 }
 0x565   :  { %3544 = vmatprep.subr.bf16.mxu1 %v3775_v52 }
 0x568   :  { %3545 = vmatpush3.bf16.msra.mxu1 %v3775_v52 }
 0x569   :  { %3550 = vmatprep.subr.bf16.mxu1 %v3776_v61 }
 0x56f   :  { %3547 = vmatmul.mubr.msk.bf16.vlgmr.msra.gmra.mrb[8].mxu1 %vm318_vm4, %v2246_v45 }
 0x570   :  { %3551 = vmatpush3.bf16.msra.mxu1 %v3776_v61  ;;  %3554 = vmatprep.mubr.msk.bf16.mxu1 %vm318_vm4, %v2335_v3 }
 0x571   :  { %3552 = vmatprep.subr.bf16.mxu1 %v3777_v2 }
 0x574   :  { %3553 = vmatpush3.bf16.msra.mxu1 %v3777_v2 }
 0x575   :  { %3558 = vmatprep.subr.bf16.mxu1 %v3778_v6 }
 0x57b   :  { %3555 = vmatmul.mubr.msk.bf16.vlgmr.msra.gmra.mrb[8].mxu1 %vm318_vm4, %v2336_v15 }
 0x57c   :  { %3559 = vmatpush3.bf16.msra.mxu1 %v3778_v6  ;;  %3562 = vmatprep.mubr.msk.bf16.mxu1 %vm318_vm4, %v2425_v35 }
 0x57d   :  { %3560 = vmatprep.subr.bf16.mxu1 %v3779_v34 }
 0x580   :  { %3561 = vmatpush3.bf16.msra.mxu1 %v3779_v34 }
 0x587   :  { %3563 = vmatmul.mubr.msk.bf16.vlgmr.msra.gmra.mrb[8].mxu1 %vm318_vm4, %v2426_v32 }
 0x588   :  { %3614 = vmatprep.mubr.msk.f32.mxu1 %vm3868_vm14, %v3866_v23 }
 0x65a   :  { %v3564_v21 = vpop.f32.mrb[8].mxu1 }
 0x65b   :  { %v2513_v39 = vadd.f32 %v3564_v21, %v3207_v19  ;;  %v2484_v41 = vpop.f32.mrb[9].mxu1 }
 0x65c   :  { %v2511_v42 = vadd.f32 %v3207_v19, %v2484_v41  ;;  %v3565_v43 = vpop.f32.mrb[10].mxu1 }
 0x65d   :  { %v2517_v46 = vmul.f32 0.1, %v2513_v39  ;;  %v2514_v47 = vadd.f32 %v3565_v43, %v3207_v19  ;;  %v2487_v48 = vpop.f32.mrb[11].mxu1 }
 0x65e   :  { %v2515_v49 = vmul.f32 0.1, %v2511_v42  ;;  %v2512_v50 = vadd.f32 %v3207_v19, %v2487_v48 }
 0x65f   :  { %v4361_v51 = vmax.f32 %v2513_v39, %v2517_v46  ;;  %v2518_v52 = vmul.f32 0.1, %v2514_v47 }
 0x660   :  { %v2519_v53 = vmax.f32 %v2511_v42, %v2515_v49  ;;  %v2516_v55 = vmul.f32 0.1, %v2512_v50 }
 0x661   :  { %v2532_v58 = vrot.slane %v4361_v51, 6  ;;  %v2685_v61 = vrot.slane %v4361_v51, 7  ;;  %v2522_v56 = vmax.f32 %v2514_v47, %v2518_v52  ;;  %v2775_v63 = vrot.slane %v4361_v51, 1  ;;  %v3784_v47 = vld [vmem:[#allocation5 + $0xb0] sm:$0xff]  }
 0x662   :  { %v2520_v54 = vmax.f32 %v2512_v50, %v2516_v55  ;;  %v2530_v40 = vrot.slane %v2519_v53, 6  ;;  %v2683_v59 = vrot.slane %v2519_v53, 7  ;;  %v2773_v0 = vrot.slane %v2519_v53, 1  ;;  %v3786_v55 = vld [vmem:[#allocation5 + $0xd0] sm:$0xff]  }
 0x663   :  { %v2776_v57 = vrot.slane %v2522_v56, 1  ;;  %v2866_v45 = vrot.slane %v2522_v56, 2  ;;  %v2533_v1 = vrot.slane %v2522_v56, 6  ;;  %v2524_v2 = vpack.c.bf16 %v2522_v56, %v4361_v51 }
 0x664   :  { %v2531_v3 = vrot.slane %v2520_v54, 6  ;;  %v2523_v4 = vpack.c.bf16 %v2520_v54, %v2519_v53  ;;  %v2684_v5 = vrot.slane %v2520_v54, 7  ;;  %v2686_v6 = vrot.slane %v2522_v56, 7  ;;  %v2991_v56 = vld [vmem:[%s4465_s7 + $0x10] sm:$0xff] }
 0x665   :  { %v2537_v8 = vsel %vm291_vm3, %v2533_v1, %v2530_v40  ;;  %v2534_v9 = vsel %vm291_vm3, %v2532_v58, %v2533_v1  ;;  %v2774_v10 = vrot.slane %v2520_v54, 1  ;;  %v2777_v11 = vsel %vm536_vm8, %v2775_v63, %v2776_v57 }
 0x666   :  { %v2536_v12 = vsel %vm291_vm3, %v2530_v40, %v2531_v3  ;;  %v2538_v13 = vmul.f32 %v2537_v8, %v3971_v24  ;;  %v2535_v14 = vsel %vm291_vm3, %v2531_v3, %v2532_v58  ;;  %v2689_v15 = vsel %vm445_vm6, %v2683_v59, %v2684_v5  ;;  %v2989_v58 = vld [vmem:[%s4465_s7] sm:$0xff]  ;;  %v2992_v40 = vld [vmem:[%s4465_s7 + $0x18] sm:$0xff] }
 0x667   :  { %v2540_v26 = vmul.f32 %v2535_v14, %v3976_v27  ;;  %v2690_v34 = vsel %vm445_vm6, %v2686_v6, %v2683_v59  ;;  %v2687_v35 = vsel %vm445_vm6, %v2685_v61, %v2686_v6  ;;  %v2688_v36 = vsel %vm445_vm6, %v2684_v5, %v2685_v61  ;;  %v2990_v61 = vld [vmem:[%s4465_s7 + $0x8] sm:$0xff] }
 0x668   :  { %v2542_v38 = vpack.c.bf16 %v2536_v12, %v2538_v13  ;;  %v2691_v24 = vmul.f32 %v2690_v34, %v3999_v44  ;;  %v2693_v29 = vmul.f32 %v2688_v36, %v4017_v60  ;;  %v2778_v30 = vsel %vm536_vm8, %v2774_v10, %v2775_v63 }
 0x669   :  { %v2543_v32 = vpack.c.bf16 %v2534_v9, %v2540_v26  ;;  %v2779_v27 = vsel %vm536_vm8, %v2773_v0, %v2774_v10  ;;  %v2782_v16 = vmul.f32 %v2778_v30, %v4022_v62  ;;  %v2780_v19 = vsel %vm536_vm8, %v2776_v57, %v2773_v0  ;;  %v3229_v0 = vld [vmem:[%s4464_s6 + $0x2] ss:$0 sm:$0xff] }
 0x66a   :  { %3570 = vmatprep.mubr.msk.bf16.mxu0 %vm318_vm4, %v2542_v38  ;;  %v2695_v21 = vpack.c.bf16 %v2689_v15, %v2691_v24  ;;  %v2696_v39 = vpack.c.bf16 %v2687_v35, %v2693_v29  ;;  %v2784_v44 = vmul.f32 %v2780_v19, %v4040_v18  ;;  %v2863_v60 = vrot.slane %v2519_v53, 2  ;;  %v3785_v53 = vld [vmem:[#allocation5 + $0xb8] sm:$0xff]  }
 0x66b   :  { %3571 = vmatmul.mubr.msk.bf16.vlgmr.msra.gmra.mrb[12].mxu0 %vm318_vm4, %v2543_v32  ;;  %v2785_v41 = vpack.c.bf16 %v2782_v16, %v2779_v27  ;;  %v2864_v42 = vrot.slane %v2520_v54, 2  ;;  %v2865_v43 = vrot.slane %v4361_v51, 2  ;;  %v3867_v63 = vmov 0.0|0.0   ;;  %v3230_v19 = vld [vmem:[%s4466_s8] ss:$0 sm:$0xff] }
 0x66c   :  { %3575 = vmatpush3.bf16.msra.mxu0 %v3782_v17  ;;  %3578 = vmatprep.mubr.msk.bf16.mxu0 %vm318_vm4, %v2523_v4  ;;  %v2786_v62 = vpack.c.bf16 %v2784_v44, %v2777_v11  ;;  %v2870_v46 = vsel %vm627_vm11, %v2866_v45, %v2863_v60  ;;  %v3618_v54 = vpack.c.bf16 %v2990_v61, %v2989_v58 }
 0x66d   :  { %3576 = vmatprep.subr.bf16.mxu0 %v3783_v33  ;;  %v2868_v48 = vsel %vm627_vm11, %v2864_v42, %v2865_v43  ;;  %v2869_v18 = vsel %vm627_vm11, %v2863_v60, %v2864_v42  ;;  %v2867_v49 = vsel %vm627_vm11, %v2865_v43, %v2866_v45  ;;  %v2874_v50 = vmul.f32 %v2870_v46, %v4060_v37  ;;  %v3789_v37 = vld [vmem:[#allocation5 + $0xe8] sm:$0xff]  }
 0x66e   :  { %v2872_v17 = vmul.f32 %v2868_v48, %v4045_v22  ;;  %v3788_v22 = vld [vmem:[#allocation5 + $0xe0] sm:$0xff]   ;;  %3617 = vmatprep.subr.bf16.mxu1 %v3867_v63  ;;  %v3621_v59 = vpack.c.bf16 %v2992_v40, %v2991_v56 }
 0x66f   :  { %v2876_v51 = vpack.c.bf16 %v2874_v50, %v2867_v49  ;;  %3619 = vmatpush3.bf16.msra.mxu1 %v3618_v54 }
 0x670   :  { %3577 = vmatpush3.bf16.msra.mxu0 %v3783_v33  ;;  %v2875_v52 = vpack.c.bf16 %v2872_v17, %v2869_v18  ;;  %3620 = vmatprep.subr.bf16.mxu1 %v3867_v63 }
 0x671   :  { %3582 = vmatprep.subr.bf16.mxu0 %v3784_v47 }
 0x673   :  { %3622 = vmatpush3.bf16.msra.mxu1 %v3621_v59 }
 0x677   :  { %3579 = vmatmul.mubr.msk.bf16.vlgmr.msra.gmra.mrb[12].mxu0 %vm318_vm4, %v2524_v2 }
 0x678   :  { %3583 = vmatpush3.bf16.msra.mxu0 %v3784_v47  ;;  %3586 = vmatprep.mubr.msk.bf16.mxu0 %vm318_vm4, %v2695_v21 }
 0x679   :  { %3584 = vmatprep.subr.bf16.mxu0 %v3785_v53 }
 0x67c   :  { %3585 = vmatpush3.bf16.msra.mxu0 %v3785_v53 }
 0x67d   :  { %3590 = vmatprep.subr.bf16.mxu0 %v3786_v55 }
 0x683   :  { %3587 = vmatmul.mubr.msk.bf16.vlgmr.msra.gmra.mrb[12].mxu0 %vm318_vm4, %v2696_v39 }
 0x684   :  { %3591 = vmatpush3.bf16.msra.mxu0 %v3786_v55  ;;  %3594 = vmatprep.mubr.msk.bf16.mxu0 %vm318_vm4, %v2785_v41 }
 0x685   :  { %3592 = vmatprep.subr.bf16.mxu0 %v3787_v7 }
 0x688   :  { %3593 = vmatpush3.bf16.msra.mxu0 %v3787_v7 }
 0x689   :  { %3598 = vmatprep.subr.bf16.mxu0 %v3788_v22 }
 0x68f   :  { %3595 = vmatmul.mubr.msk.bf16.vlgmr.msra.gmra.mrb[12].mxu0 %vm318_vm4, %v2786_v62 }
 0x690   :  { %3599 = vmatpush3.bf16.msra.mxu0 %v3788_v22  ;;  %3602 = vmatprep.mubr.msk.bf16.mxu0 %vm318_vm4, %v2875_v52 }
 0x691   :  { %3600 = vmatprep.subr.bf16.mxu0 %v3789_v37 }
 0x694   :  { %3601 = vmatpush3.bf16.msra.mxu0 %v3789_v37 }
 0x69b   :  { %3603 = vmatmul.mubr.msk.bf16.vlgmr.msra.gmra.mrb[12].mxu0 %vm318_vm4, %v2876_v51 }
 0x76e   :  { %v3604_v57 = vpop.f32.mrb[12].mxu0 }
 0x76f   :  { %v2963_v45 = vadd.f32 %v3604_v57, %v3229_v0  ;;  %v2934_v1 = vpop.f32.mrb[13].mxu0 }
 0x770   :  { %v2961_v2 = vadd.f32 %v3229_v0, %v2934_v1  ;;  %v3605_v3 = vpop.f32.mrb[14].mxu0 }
 0x771   :  { %v2967_v4 = vadd.f32 %v2963_v45, %v4277_v20  ;;  %v2964_v5 = vadd.f32 %v3605_v3, %v3229_v0  ;;  %v2937_v6 = vpop.f32.mrb[15].mxu0 }
 0x772   :  { %v2965_v8 = vadd.f32 %v2961_v2, %v4280_v25  ;;  %v2962_v23 = vadd.f32 %v3229_v0, %v2937_v6 }
 0x773   :  { %v2968_v9 = vadd.f32 %v2964_v5, %v4283_v28  ;;  %v2978_v11 = vsel %vm318_vm4, %v2967_v4, 0.0 }
 0x774   :  { %v2966_v10 = vadd.f32 %v2962_v23, %v4286_v31  ;;  %v2969_v13 = vsel %vm318_vm4, %v2965_v8, 0.0 }
 0x775   :  { %v2979_v12 = vsel %vm318_vm4, %v2968_v9, 0.0 }
 0x776   :  { %v2980_v14 = vadd.f32 %v2979_v12, %v2978_v11  ;;  %v2970_v15 = vsel %vm318_vm4, %v2966_v10, 0.0 }
 0x777   :  { %v2971_v26 = vadd.f32 %v2970_v15, %v2969_v13 }
 0x778   :  { %v2981_v20 = vrot.slane %v2980_v14, 4 }
 0x779   :  { %v2972_v34 = vrot.slane %v2971_v26, 4 }
 0x77a   :  { %v2982_v35 = vadd.f32 %v2981_v20, %v2980_v14 }
 0x77b   :  { %v2973_v36 = vadd.f32 %v2972_v34, %v2971_v26 }
 0x77c   :  { %v2983_v25 = vrot.slane %v2982_v35, 2 }
 0x77d   :  { %v2974_v38 = vrot.slane %v2973_v36, 2 }
 0x77e   :  { %v2984_v24 = vadd.f32 %v2983_v25, %v2982_v35 }
 0x77f   :  { %v2975_v28 = vadd.f32 %v2974_v38, %v2973_v36 }
 0x780   :  { %v2985_v29 = vrot.slane %v2984_v24, 1 }
 0x781   :  { %v2976_v31 = vrot.slane %v2975_v28, 1 }
 0x782   :  { %v2986_v30 = vadd.f32 %v2985_v29, %v2984_v24 }
 0x783   :  { %v2977_v32 = vadd.f32 %v2976_v31, %v2975_v28 }
 0x784   :  { %v2988_v33 = vmul.f32 0.0625, %v2986_v30 }
 0x785   :  { %v2987_v27 = vmul.f32 0.0625, %v2977_v32 }
 0x787   :  { %v3003_v16 = vsel %vm3002_vm15, %v2988_v33, %v2987_v27 }
 0x788   :  { %3615 = vmatmul.mubr.msk.f32.vlgmr.msra.gmra.mrb[12].mxu1 %vm318_vm4, %v3003_v16 }
 0x85b   :  { %v3072_v21 = vpop.f32.mrb[12].mxu1 }
 0x85c   :  { %v3073_v39 = vadd.f32 %v3230_v19, %v3072_v21  ;;  %v3616_v44 = vpop.f32.mrb[13].mxu1 }
 0x85e   :  { %3077 = vst.msk [vmem:[#allocation7] sm:$0x3] %vm3076_vm0, %v3073_v39 }
 0x85f   :  { %3845 = shalt.err (!%p3842_p6)
}
 0x860   :  { %s3846_s0 = scalar_lea.hbm %s4467_s9, 32 }
 0x861   :  { %p3847_p7 = scmp.ne.s32.totalorder %s4467_s9, %s3846_s0  ;;  %p3850_p8 = scmp.lt.u32.totalorder %s3846_s0, %s4467_s9 }
 0x863   :  { %p3852_p9 = pnand %p3850_p8, %p3847_p7 }
 0x865   :  { %3855 = shalt.err (!%p3852_p9)
}
 0x866   :  { %3087 = dma.vmem_to_hbm [thread:$0]  %s3085_s15, 32, %s4467_s9, [#allocation4]  }
 0x867   :  { %3860 = dma.done.wait [#allocation4], 32  }
 0x868   :  { %3861 = vsyncadd [#allocation4], 4294967264 }
 0x869   :  { %3091 = vsyncpa [#allocation3], 1 }
 0x86a   :  { %3092 = vsyncpa [#allocation6], 1 }
 0x86b   :  { %3093 = vsyncpa [#allocation4], 1 }

</bundles_post_ra>
